<compile_context>
chip_gen: v7x
topology: tpu7x:2x2x1
jax: 0.10.0
libtpu: 0.0.40
codegen_flags: <defaults>
</compile_context>

<pallas_src>
import functools

import jax
import jax.numpy as jnp
from jax import lax
from jax.experimental import pallas as pl
from jax.experimental.pallas import tpu as pltpu


# ----------------------------- math helpers -----------------------------

def _layernorm(x, g, b, eps=1e-5):
    # nn.LayerNorm default eps=1e-5 (matches the PyTorch reference).
    mu = jnp.mean(x, axis=-1, keepdims=True)
    var = jnp.mean((x - mu) ** 2, axis=-1, keepdims=True)
    return (x - mu) * lax.rsqrt(var + eps) * g + b


def _gelu_tanh(x):
    # tanh-approximate GELU: hits the EUP (tanh) instead of a long VALU
    # erf polynomial.  Numerics differ from exact erf GELU at the ~1e-3 level.
    c = 0.7978845608028654  # sqrt(2/pi)
    return 0.5 * x * (1.0 + jnp.tanh(c * (x + 0.044715 * x * x * x)))


# --------------------- fused transformer-stack kernel ---------------------

def _bert_stack_kernel(num_heads,
                       h0_ref, mask_ref,
                       wqkv_ref, bqkv_ref, wo_ref, bo_ref,
                       ln1_g_ref, ln1_b_ref,
                       w1_ref, b1_ref, w2_ref, b2_ref,
                       ln2_g_ref, ln2_b_ref,
                       hid_out_ref, attn_out_ref,
                       h_carry):
    layer = pl.program_id(1)

    # At the first layer, load the embedded hidden state into the VMEM carry.
    @pl.when(layer == 0)
    def _():
        h_carry[...] = h0_ref[0]

    h = h_carry[...]                                  # [S, D] f32
    S, D = h.shape
    hd = D // num_heads
    mask = mask_ref[0]                                # [1, S]
    bias = (1.0 - mask) * (-1e4)                      # additive key mask
    scale = 1.0 / jnp.sqrt(jnp.float32(hd))

    h_bf = h.astype(jnp.bfloat16)

    # Fused QKV projection: one lane-dense [S, D] x [D, 3D] matmul.
    qkv = jnp.dot(h_bf, wqkv_ref[0],
                  preferred_element_type=jnp.float32) + bqkv_ref[0]   # [S, 3D]
    q = qkv[:, :D]
    k = qkv[:, D:2 * D]
    v = qkv[:, 2 * D:]

    ctxs = []
    for head in range(num_heads):                     # static unroll over heads
        lo = head * hd
        qh = q[:, lo:lo + hd].astype(jnp.bfloat16)
        kh = k[:, lo:lo + hd].astype(jnp.bfloat16)
        vh = v[:, lo:lo + hd].astype(jnp.bfloat16)
        # scores without explicit transpose: contract last dims of q and k
        s = lax.dot_general(qh, kh,
                            dimension_numbers=(((1,), (1,)), ((), ())),
                            preferred_element_type=jnp.float32)       # [S, S]
        s = s * scale + bias
        s = s - jnp.max(s, axis=-1, keepdims=True)
        p = jnp.exp(s)
        p = p * pl.reciprocal(jnp.sum(p, axis=-1, keepdims=True), approx=True)
        attn_out_ref[0, 0, head] = p
        ctxs.append(jnp.dot(p.astype(jnp.bfloat16), vh,
                            preferred_element_type=jnp.float32))      # [S, hd]

    ctx = jnp.concatenate(ctxs, axis=-1)              # [S, D]
    attn_out = jnp.dot(ctx.astype(jnp.bfloat16), wo_ref[0],
                       preferred_element_type=jnp.float32) + bo_ref[0]

    # attention sub-layer: residual + LayerNorm (standard BERT semantics)
    x = _layernorm(h + attn_out, ln1_g_ref[0], ln1_b_ref[0])

    # feed-forward: Linear -> GELU -> Linear (dropout = identity in eval)
    ff = jnp.dot(x.astype(jnp.bfloat16), w1_ref[0],
                 preferred_element_type=jnp.float32) + b1_ref[0]
    ff = _gelu_tanh(ff)
    ff = jnp.dot(ff.astype(jnp.bfloat16), w2_ref[0],
                 preferred_element_type=jnp.float32) + b2_ref[0]

    out = _layernorm(ff + x, ln2_g_ref[0], ln2_b_ref[0])
    h_carry[...] = out                                # carry to next layer
    hid_out_ref[0, 0] = out


def bert_stack_call(hidden0, mask3, layer_params, num_heads):
    B, S, D = hidden0.shape
    L = layer_params[0].shape[0]
    H = num_heads

    kernel = functools.partial(_bert_stack_kernel, H)

    def _act_spec(shape):
        zeros = (0,) * (len(shape) - 1)
        return pl.BlockSpec((1,) + tuple(shape[1:]),
                            lambda b, l, _z=zeros: (b,) + _z)

    def _w_spec(shape):
        zeros = (0,) * (len(shape) - 1)
        return pl.BlockSpec((1,) + tuple(shape[1:]),
                            lambda b, l, _z=zeros: (l,) + _z)

    in_specs = [_act_spec(hidden0.shape), _act_spec(mask3.shape)]
    in_specs += [_w_spec(p.shape) for p in layer_params]

    out_specs = [
        pl.BlockSpec((1, 1, S, D), lambda b, l: (l, b, 0, 0)),
        pl.BlockSpec((1, 1, H, S, S), lambda b, l: (l, b, 0, 0, 0)),
    ]
    out_shape = [
        jax.ShapeDtypeStruct((L, B, S, D), jnp.float32),
        jax.ShapeDtypeStruct((L, B, H, S, S), jnp.float32),
    ]
    return pl.pallas_call(
        kernel,
        grid=(B, L),
        in_specs=in_specs,
        out_specs=out_specs,
        out_shape=out_shape,
        scratch_shapes=[pltpu.VMEM((S, D), jnp.float32)],
        compiler_params=pltpu.CompilerParams(
            dimension_semantics=("parallel", "arbitrary"),
            vmem_limit_bytes=32 * 1024 * 1024,
        ),
    )(hidden0, mask3, *layer_params)


# --------------------- pooler + classifier-heads kernel ---------------------

def _heads_kernel(cls_ref, wp_ref, bp_ref, wg1_ref, bg1_ref, wg2_ref, bg2_ref,
                  wr1_ref, br1_ref, wr2_ref, br2_ref,
                  pool_ref, gov_ref, rec_ref):
    x = cls_ref[...]                                              # [B, D]
    pooled = jnp.tanh(jnp.dot(x.astype(jnp.bfloat16), wp_ref[...],
                              preferred_element_type=jnp.float32) + bp_ref[...])
    pool_ref[...] = pooled

    def classifier(w1, b1, w2, b2):
        hdn = jnp.maximum(jnp.dot(pooled.astype(jnp.bfloat16), w1,
                                  preferred_element_type=jnp.float32) + b1, 0.0)
        logits = jnp.dot(hdn.astype(jnp.bfloat16), w2,
                         preferred_element_type=jnp.float32) + b2
        logits = logits - jnp.max(logits, axis=-1, keepdims=True)
        e = jnp.exp(logits)
        return e * pl.reciprocal(jnp.sum(e, axis=-1, keepdims=True), approx=True)

    gov_ref[...] = classifier(wg1_ref[...], bg1_ref[...], wg2_ref[...], bg2_ref[...])
    rec_ref[...] = classifier(wr1_ref[...], br1_ref[...], wr2_ref[...], br2_ref[...])


def heads_call(cls_hidden, head_params, n_gov=10, n_rec=3):
    B, D = cls_hidden.shape
    out_shape = (jax.ShapeDtypeStruct((B, D), jnp.float32),
                 jax.ShapeDtypeStruct((B, n_gov), jnp.float32),
                 jax.ShapeDtypeStruct((B, n_rec), jnp.float32))
    return pl.pallas_call(_heads_kernel, out_shape=out_shape)(cls_hidden, *head_params)


# ------------------------------ parameters ------------------------------

def init_params(key, cfg):
    D, H, F, L = cfg["d_model"], cfg["num_heads"], cfg["d_ff"], cfg["num_layers"]
    V, Smax = cfg["vocab_size"], cfg["max_length"]

    def nrm(k, shape, scale=0.05, dtype=jnp.bfloat16):
        return (jax.random.normal(k, shape, jnp.float32) * scale).astype(dtype)

    keys = jax.random.split(key, 3 + L)
    params = {
        "tok_emb": nrm(keys[0], (V, D), 0.02, jnp.float32),
        "pos_emb": nrm(keys[1], (Smax, D), 0.02, jnp.float32),
        "emb_ln_g": jnp.ones((D,), jnp.float32),
        "emb_ln_b": jnp.zeros((D,), jnp.float32),
    }

    # Per-layer weights stacked on a leading layer axis; matmul weights in
    # bf16 (MXU operands), biases / LayerNorm params in f32.
    wqkv, wo, w1, w2 = [], [], [], []
    for i in range(L):
        k = jax.random.split(keys[3 + i], 4)
        wqkv.append(nrm(k[0], (D, 3 * D)))
        wo.append(nrm(k[1], (D, D)))
        w1.append(nrm(k[2], (D, F)))
        w2.append(nrm(k[3], (F, D)))
    params["layers"] = (
        jnp.stack(wqkv), jnp.zeros((L, 1, 3 * D), jnp.float32),      # Wqkv, bqkv
        jnp.stack(wo), jnp.zeros((L, 1, D), jnp.float32),            # Wo, bo
        jnp.ones((L, 1, D), jnp.float32), jnp.zeros((L, 1, D), jnp.float32),  # attn LN
        jnp.stack(w1), jnp.zeros((L, 1, F), jnp.float32),            # FFN W1, b1
        jnp.stack(w2), jnp.zeros((L, 1, D), jnp.float32),            # FFN W2, b2
        jnp.ones((L, 1, D), jnp.float32), jnp.zeros((L, 1, D), jnp.float32),  # out LN
    )

    hk = jax.random.split(keys[2], 5)
    params["head"] = (
        nrm(hk[0], (D, D)), jnp.zeros((1, D), jnp.float32),          # pooler
        nrm(hk[1], (D, D // 2)), jnp.zeros((1, D // 2), jnp.float32),  # gov fc1
        nrm(hk[2], (D // 2, 10)), jnp.zeros((1, 10), jnp.float32),   # gov fc2
        nrm(hk[3], (D, D // 2)), jnp.zeros((1, D // 2), jnp.float32),  # rec fc1
        nrm(hk[4], (D // 2, 3)), jnp.zeros((1, 3), jnp.float32),     # rec fc2
    )
    return params


# ------------------------------ forward pass ------------------------------

def fast_bert_forward(params, input_ids, attention_mask, cfg):
    B, S = input_ids.shape
    H, L = cfg["num_heads"], cfg["num_layers"]

    # embeddings (glue): token + positional + LayerNorm (dropout = identity)
    tok = params["tok_emb"][input_ids]                       # [B, S, D]
    pos = params["pos_emb"][:S][None, :, :]
    hidden0 = _layernorm(tok + pos, params["emb_ln_g"], params["emb_ln_b"])

    mask3 = attention_mask.astype(jnp.float32)[:, None, :]   # [B, 1, S]

    # entire transformer stack in one pallas_call (hidden stays in VMEM)
    hid_all, attn_all = bert_stack_call(hidden0, mask3, params["layers"], H)

    all_hidden = [hidden0] + [hid_all[i] for i in range(L)]
    all_attn = [attn_all[i] for i in range(L)]
    hidden = hid_all[L - 1]

    cls_hidden = hidden[:, 0, :]
    pooled, gov_probs, rec_probs = heads_call(cls_hidden, params["head"])

    # confidence scores (scalar bookkeeping, plain JAX)
    gov_conf = jnp.mean(jnp.max(gov_probs, axis=-1))
    rec_conf = jnp.mean(jnp.max(rec_probs, axis=-1))
    hidden_stability = 1.0 - jnp.mean(jnp.std(hidden, axis=1, ddof=1))  # torch unbiased std
    confidence = {
        "government_confidence": gov_conf,
        "recommendation_confidence": rec_conf,
        "attention_consistency": jnp.float32(0.0),   # hard-coded 0.0 in reference
        "hidden_stability": hidden_stability,
        "token_quality": jnp.float32(1.0),
        "overall_confidence": (gov_conf + rec_conf + hidden_stability + 1.0) / 4.0,
    }
    return {
        "last_hidden_state": hidden,
        "pooler_output": pooled,
        "attention_weights": all_attn,
        "hidden_states": all_hidden,
        "government_probs": gov_probs,
        "recommendation_probs": rec_probs,
        "confidence_scores": confidence,
    }


# ---------------------------------- main ----------------------------------

if __name__ == "__main__":
    cfg = dict(vocab_size=100, d_model=32, num_layers=2, num_heads=4,
               d_ff=64, max_length=16)
    B, S = 2, 8

    key = jax.random.PRNGKey(0)
    k_param, k_ids = jax.random.split(key)
    params = init_params(k_param, cfg)

    input_ids = jax.random.randint(k_ids, (B, S), 0, cfg["vocab_size"], dtype=jnp.int32)
    attention_mask = jnp.array([[1] * S, [1] * (S - 2) + [0] * 2], dtype=jnp.int32)

    out = fast_bert_forward(params, input_ids, attention_mask, cfg)
    jax.block_until_ready(out["last_hidden_state"])
    jax.block_until_ready(out["pooler_output"])
    jax.block_until_ready(out["government_probs"])
    jax.block_until_ready(out["recommendation_probs"])
    jax.block_until_ready(out["confidence_scores"]["overall_confidence"])

    assert out["last_hidden_state"].shape == (B, S, cfg["d_model"])
    assert out["pooler_output"].shape == (B, cfg["d_model"])
    assert out["government_probs"].shape == (B, 10)
    assert out["recommendation_probs"].shape == (B, 3)
    assert out["attention_weights"][0].shape == (B, cfg["num_heads"], S, S)
    assert len(out["hidden_states"]) == cfg["num_layers"] + 1

    print("KERNEL_OK")
</pallas_src>

<mosaic_0001>
module attributes {stable_mosaic.version = 11 : i64} {
  func.func @_bert_stack_kernel(%arg0: i32, %arg1: i32, %arg2: memref<1x8x32xf32, #tpu.memory_space<vmem>>, %arg3: memref<1x1x8xf32, #tpu.memory_space<vmem>>, %arg4: memref<1x32x96xbf16, #tpu.memory_space<vmem>>, %arg5: memref<1x1x96xf32, #tpu.memory_space<vmem>>, %arg6: memref<1x32x32xbf16, #tpu.memory_space<vmem>>, %arg7: memref<1x1x32xf32, #tpu.memory_space<vmem>>, %arg8: memref<1x1x32xf32, #tpu.memory_space<vmem>>, %arg9: memref<1x1x32xf32, #tpu.memory_space<vmem>>, %arg10: memref<1x32x64xbf16, #tpu.memory_space<vmem>>, %arg11: memref<1x1x64xf32, #tpu.memory_space<vmem>>, %arg12: memref<1x64x32xbf16, #tpu.memory_space<vmem>>, %arg13: memref<1x1x32xf32, #tpu.memory_space<vmem>>, %arg14: memref<1x1x32xf32, #tpu.memory_space<vmem>>, %arg15: memref<1x1x32xf32, #tpu.memory_space<vmem>>, %arg16: memref<1x1x8x32xf32, #tpu.memory_space<vmem>>, %arg17: memref<1x1x4x8x8xf32, #tpu.memory_space<vmem>>, %arg18: memref<8x32xf32, #tpu.memory_space<vmem>>) attributes {dimension_semantics = [#tpu.dimension_semantics<parallel>, #tpu.dimension_semantics<arbitrary>], iteration_bounds = array<i64: 2, 2>, scalar_prefetch = 0 : i64, scratch_operands = 1 : i64, tpu.core_type = #tpu.core_type<tc>, window_params = [{transform_indices = @transform_0, window_bounds = array<i64: 1, 8, 32>}, {transform_indices = @transform_1, window_bounds = array<i64: 1, 1, 8>}, {transform_indices = @transform_2, window_bounds = array<i64: 1, 32, 96>}, {transform_indices = @transform_3, window_bounds = array<i64: 1, 1, 96>}, {transform_indices = @transform_4, window_bounds = array<i64: 1, 32, 32>}, {transform_indices = @transform_5, window_bounds = array<i64: 1, 1, 32>}, {transform_indices = @transform_6, window_bounds = array<i64: 1, 1, 32>}, {transform_indices = @transform_7, window_bounds = array<i64: 1, 1, 32>}, {transform_indices = @transform_8, window_bounds = array<i64: 1, 32, 64>}, {transform_indices = @transform_9, window_bounds = array<i64: 1, 1, 64>}, {transform_indices = @transform_10, window_bounds = array<i64: 1, 64, 32>}, {transform_indices = @transform_11, window_bounds = array<i64: 1, 1, 32>}, {transform_indices = @transform_12, window_bounds = array<i64: 1, 1, 32>}, {transform_indices = @transform_13, window_bounds = array<i64: 1, 1, 32>}, {transform_indices = @transform_14, window_bounds = array<i64: 1, 1, 8, 32>}, {transform_indices = @transform_15, window_bounds = array<i64: 1, 1, 4, 8, 8>}]} {
    %c0_i32 = arith.constant 0 : i32
    %0 = arith.cmpi eq, %arg1, %c0_i32 : i32
    %1 = arith.extui %0 : i1 to i32
    %c0_i32_0 = arith.constant 0 : i32
    %2 = arith.cmpi ne, %1, %c0_i32_0 : i32
    scf.if %2 {
      %c0_101 = arith.constant 0 : index
      %c0_102 = arith.constant 0 : index
      %c0_103 = arith.constant 0 : index
      %223 = vector.load %arg2[%c0_101, %c0_102, %c0_103] : memref<1x8x32xf32, #tpu.memory_space<vmem>>, vector<1x8x32xf32>
      %224 = vector.shape_cast %223 : vector<1x8x32xf32> to vector<8x32xf32>
      %c0_104 = arith.constant 0 : index
      %c0_105 = arith.constant 0 : index
      %225 = vector.load %arg18[%c0_104, %c0_105] : memref<8x32xf32, #tpu.memory_space<vmem>>, vector<8x32xf32>
      tpu.vector_store %arg18[%c0_104, %c0_105], %224 {strides = array<i32>} : memref<8x32xf32, #tpu.memory_space<vmem>>, vector<8x32xf32>,
    } else {
    }
    %c0 = arith.constant 0 : index
    %c0_1 = arith.constant 0 : index
    %3 = vector.load %arg18[%c0, %c0_1] : memref<8x32xf32, #tpu.memory_space<vmem>>, vector<8x32xf32>
    %c0_2 = arith.constant 0 : index
    %c0_3 = arith.constant 0 : index
    %c0_4 = arith.constant 0 : index
    %4 = vector.load %arg3[%c0_2, %c0_3, %c0_4] : memref<1x1x8xf32, #tpu.memory_space<vmem>>, vector<1x1x8xf32>
    %5 = vector.shape_cast %4 : vector<1x1x8xf32> to vector<1x8xf32>
    %cst = arith.constant 1.000000e+00 : f32
    %6 = vector.broadcast %cst : f32 to vector<1x8xf32>
    %7 = arith.subf %6, %5 : vector<1x8xf32>
    %cst_5 = arith.constant -1.000000e+04 : f32
    %8 = vector.broadcast %cst_5 : f32 to vector<1x8xf32>
    %9 = arith.mulf %7, %8 : vector<1x8xf32>
    %cst_6 = arith.constant 8.000000e+00 : f32
    %10 = math.sqrt %cst_6 : f32
    %cst_7 = arith.constant 1.000000e+00 : f32
    %11 = arith.divf %cst_7, %10 : f32
    %12 = arith.truncf %3 : vector<8x32xf32> to vector<8x32xbf16>
    %c0_8 = arith.constant 0 : index
    %c0_9 = arith.constant 0 : index
    %c0_10 = arith.constant 0 : index
    %13 = vector.load %arg4[%c0_8, %c0_9, %c0_10] : memref<1x32x96xbf16, #tpu.memory_space<vmem>>, vector<1x32x96xbf16>
    %14 = vector.shape_cast %13 : vector<1x32x96xbf16> to vector<32x96xbf16>
    %cst_11 = arith.constant dense<0.000000e+00> : vector<8x96xf32>
    %15 = tpu.matmul %12, %14, %cst_11 {dimension_numbers = #tpu.dot_dimension_numbers<[1], [0], [0], [1], [0, 0, 1, 1], [], []>} : vector<8x32xbf16>, vector<32x96xbf16>, vector<8x96xf32> -> vector<8x96xf32>
    %c0_12 = arith.constant 0 : index
    %c0_13 = arith.constant 0 : index
    %c0_14 = arith.constant 0 : index
    %16 = vector.load %arg5[%c0_12, %c0_13, %c0_14] : memref<1x1x96xf32, #tpu.memory_space<vmem>>, vector<1x1x96xf32>
    %17 = vector.shape_cast %16 : vector<1x1x96xf32> to vector<1x96xf32>
    %18 = vector.broadcast %17 : vector<1x96xf32> to vector<8x96xf32>
    %19 = arith.addf %15, %18 : vector<8x96xf32>
    %20 = vector.extract_strided_slice %19 {offsets = [0, 0], sizes = [8, 32], strides = [1, 1]} : vector<8x96xf32> to vector<8x32xf32>
    %21 = vector.extract_strided_slice %19 {offsets = [0, 32], sizes = [8, 32], strides = [1, 1]} : vector<8x96xf32> to vector<8x32xf32>
    %22 = vector.extract_strided_slice %19 {offsets = [0, 64], sizes = [8, 32], strides = [1, 1]} : vector<8x96xf32> to vector<8x32xf32>
    %23 = vector.extract_strided_slice %20 {offsets = [0, 0], sizes = [8, 8], strides = [1, 1]} : vector<8x32xf32> to vector<8x8xf32>
    %24 = arith.truncf %23 : vector<8x8xf32> to vector<8x8xbf16>
    %25 = vector.extract_strided_slice %21 {offsets = [0, 0], sizes = [8, 8], strides = [1, 1]} : vector<8x32xf32> to vector<8x8xf32>
    %26 = arith.truncf %25 : vector<8x8xf32> to vector<8x8xbf16>
    %27 = vector.extract_strided_slice %22 {offsets = [0, 0], sizes = [8, 8], strides = [1, 1]} : vector<8x32xf32> to vector<8x8xf32>
    %28 = arith.truncf %27 : vector<8x8xf32> to vector<8x8xbf16>
    %cst_15 = arith.constant dense<0.000000e+00> : vector<8x8xf32>
    %29 = tpu.matmul %24, %26, %cst_15 {dimension_numbers = #tpu.dot_dimension_numbers<[1], [1], [0], [0], [0, 0, 1, 0], [], []>} : vector<8x8xbf16>, vector<8x8xbf16>, vector<8x8xf32> -> vector<8x8xf32>
    %30 = vector.broadcast %11 : f32 to vector<8x8xf32>
    %31 = arith.mulf %29, %30 : vector<8x8xf32>
    %32 = vector.broadcast %9 : vector<1x8xf32> to vector<8x8xf32>
    %33 = arith.addf %31, %32 : vector<8x8xf32>
    %cst_16 = arith.constant dense<0xFF800000> : vector<8xf32>
    %34 = vector.multi_reduction <maximumf>, %33, %cst_16 [1] : vector<8x8xf32> to vector<8xf32>
    %35 = vector.shape_cast %34 : vector<8xf32> to vector<8x1xf32>
    %36 = vector.broadcast %35 : vector<8x1xf32> to vector<8x8xf32>
    %37 = arith.subf %33, %36 : vector<8x8xf32>
    %38 = math.exp %37 : vector<8x8xf32>
    %cst_17 = arith.constant dense<0.000000e+00> : vector<8xf32>
    %39 = vector.multi_reduction <add>, %38, %cst_17 [1] : vector<8x8xf32> to vector<8xf32>
    %40 = vector.shape_cast %39 : vector<8xf32> to vector<8x1xf32>
    %41 = tpu.reciprocal %40 {approx = true} : vector<8x1xf32> -> vector<8x1xf32>
    %42 = vector.broadcast %41 : vector<8x1xf32> to vector<8x8xf32>
    %43 = arith.mulf %38, %42 : vector<8x8xf32>
    %c0_18 = arith.constant 0 : index
    %c0_19 = arith.constant 0 : index
    %c0_20 = arith.constant 0 : index
    %c0_21 = arith.constant 0 : index
    %c0_22 = arith.constant 0 : index
    %44 = vector.load %arg17[%c0_18, %c0_19, %c0_20, %c0_21, %c0_22] : memref<1x1x4x8x8xf32, #tpu.memory_space<vmem>>, vector<1x1x1x8x8xf32>
    %45 = vector.shape_cast %44 : vector<1x1x1x8x8xf32> to vector<8x8xf32>
    %46 = vector.shape_cast %43 : vector<8x8xf32> to vector<1x1x1x8x8xf32>
    tpu.vector_store %arg17[%c0_18, %c0_19, %c0_20, %c0_21, %c0_22], %46 {strides = array<i32>} : memref<1x1x4x8x8xf32, #tpu.memory_space<vmem>>, vector<1x1x1x8x8xf32>,
    %47 = arith.truncf %43 : vector<8x8xf32> to vector<8x8xbf16>
    %cst_23 = arith.constant dense<0.000000e+00> : vector<8x8xf32>
    %48 = tpu.matmul %47, %28, %cst_23 {dimension_numbers = #tpu.dot_dimension_numbers<[1], [0], [0], [1], [0, 0, 1, 1], [], []>} : vector<8x8xbf16>, vector<8x8xbf16>, vector<8x8xf32> -> vector<8x8xf32>
    %49 = vector.extract_strided_slice %20 {offsets = [0, 8], sizes = [8, 8], strides = [1, 1]} : vector<8x32xf32> to vector<8x8xf32>
    %50 = arith.truncf %49 : vector<8x8xf32> to vector<8x8xbf16>
    %51 = vector.extract_strided_slice %21 {offsets = [0, 8], sizes = [8, 8], strides = [1, 1]} : vector<8x32xf32> to vector<8x8xf32>
    %52 = arith.truncf %51 : vector<8x8xf32> to vector<8x8xbf16>
    %53 = vector.extract_strided_slice %22 {offsets = [0, 8], sizes = [8, 8], strides = [1, 1]} : vector<8x32xf32> to vector<8x8xf32>
    %54 = arith.truncf %53 : vector<8x8xf32> to vector<8x8xbf16>
    %cst_24 = arith.constant dense<0.000000e+00> : vector<8x8xf32>
    %55 = tpu.matmul %50, %52, %cst_24 {dimension_numbers = #tpu.dot_dimension_numbers<[1], [1], [0], [0], [0, 0, 1, 0], [], []>} : vector<8x8xbf16>, vector<8x8xbf16>, vector<8x8xf32> -> vector<8x8xf32>
    %56 = vector.broadcast %11 : f32 to vector<8x8xf32>
    %57 = arith.mulf %55, %56 : vector<8x8xf32>
    %58 = vector.broadcast %9 : vector<1x8xf32> to vector<8x8xf32>
    %59 = arith.addf %57, %58 : vector<8x8xf32>
    %cst_25 = arith.constant dense<0xFF800000> : vector<8xf32>
    %60 = vector.multi_reduction <maximumf>, %59, %cst_25 [1] : vector<8x8xf32> to vector<8xf32>
    %61 = vector.shape_cast %60 : vector<8xf32> to vector<8x1xf32>
    %62 = vector.broadcast %61 : vector<8x1xf32> to vector<8x8xf32>
    %63 = arith.subf %59, %62 : vector<8x8xf32>
    %64 = math.exp %63 : vector<8x8xf32>
    %cst_26 = arith.constant dense<0.000000e+00> : vector<8xf32>
    %65 = vector.multi_reduction <add>, %64, %cst_26 [1] : vector<8x8xf32> to vector<8xf32>
    %66 = vector.shape_cast %65 : vector<8xf32> to vector<8x1xf32>
    %67 = tpu.reciprocal %66 {approx = true} : vector<8x1xf32> -> vector<8x1xf32>
    %68 = vector.broadcast %67 : vector<8x1xf32> to vector<8x8xf32>
    %69 = arith.mulf %64, %68 : vector<8x8xf32>
    %c0_27 = arith.constant 0 : index
    %c0_28 = arith.constant 0 : index
    %c1 = arith.constant 1 : index
    %c0_29 = arith.constant 0 : index
    %c0_30 = arith.constant 0 : index
    %70 = vector.load %arg17[%c0_27, %c0_28, %c1, %c0_29, %c0_30] : memref<1x1x4x8x8xf32, #tpu.memory_space<vmem>>, vector<1x1x1x8x8xf32>
    %71 = vector.shape_cast %70 : vector<1x1x1x8x8xf32> to vector<8x8xf32>
    %72 = vector.shape_cast %69 : vector<8x8xf32> to vector<1x1x1x8x8xf32>
    tpu.vector_store %arg17[%c0_27, %c0_28, %c1, %c0_29, %c0_30], %72 {strides = array<i32>} : memref<1x1x4x8x8xf32, #tpu.memory_space<vmem>>, vector<1x1x1x8x8xf32>,
    %73 = arith.truncf %69 : vector<8x8xf32> to vector<8x8xbf16>
    %cst_31 = arith.constant dense<0.000000e+00> : vector<8x8xf32>
    %74 = tpu.matmul %73, %54, %cst_31 {dimension_numbers = #tpu.dot_dimension_numbers<[1], [0], [0], [1], [0, 0, 1, 1], [], []>} : vector<8x8xbf16>, vector<8x8xbf16>, vector<8x8xf32> -> vector<8x8xf32>
    %75 = vector.extract_strided_slice %20 {offsets = [0, 16], sizes = [8, 8], strides = [1, 1]} : vector<8x32xf32> to vector<8x8xf32>
    %76 = arith.truncf %75 : vector<8x8xf32> to vector<8x8xbf16>
    %77 = vector.extract_strided_slice %21 {offsets = [0, 16], sizes = [8, 8], strides = [1, 1]} : vector<8x32xf32> to vector<8x8xf32>
    %78 = arith.truncf %77 : vector<8x8xf32> to vector<8x8xbf16>
    %79 = vector.extract_strided_slice %22 {offsets = [0, 16], sizes = [8, 8], strides = [1, 1]} : vector<8x32xf32> to vector<8x8xf32>
    %80 = arith.truncf %79 : vector<8x8xf32> to vector<8x8xbf16>
    %cst_32 = arith.constant dense<0.000000e+00> : vector<8x8xf32>
    %81 = tpu.matmul %76, %78, %cst_32 {dimension_numbers = #tpu.dot_dimension_numbers<[1], [1], [0], [0], [0, 0, 1, 0], [], []>} : vector<8x8xbf16>, vector<8x8xbf16>, vector<8x8xf32> -> vector<8x8xf32>
    %82 = vector.broadcast %11 : f32 to vector<8x8xf32>
    %83 = arith.mulf %81, %82 : vector<8x8xf32>
    %84 = vector.broadcast %9 : vector<1x8xf32> to vector<8x8xf32>
    %85 = arith.addf %83, %84 : vector<8x8xf32>
    %cst_33 = arith.constant dense<0xFF800000> : vector<8xf32>
    %86 = vector.multi_reduction <maximumf>, %85, %cst_33 [1] : vector<8x8xf32> to vector<8xf32>
    %87 = vector.shape_cast %86 : vector<8xf32> to vector<8x1xf32>
    %88 = vector.broadcast %87 : vector<8x1xf32> to vector<8x8xf32>
    %89 = arith.subf %85, %88 : vector<8x8xf32>
    %90 = math.exp %89 : vector<8x8xf32>
    %cst_34 = arith.constant dense<0.000000e+00> : vector<8xf32>
    %91 = vector.multi_reduction <add>, %90, %cst_34 [1] : vector<8x8xf32> to vector<8xf32>
    %92 = vector.shape_cast %91 : vector<8xf32> to vector<8x1xf32>
    %93 = tpu.reciprocal %92 {approx = true} : vector<8x1xf32> -> vector<8x1xf32>
    %94 = vector.broadcast %93 : vector<8x1xf32> to vector<8x8xf32>
    %95 = arith.mulf %90, %94 : vector<8x8xf32>
    %c0_35 = arith.constant 0 : index
    %c0_36 = arith.constant 0 : index
    %c2 = arith.constant 2 : index
    %c0_37 = arith.constant 0 : index
    %c0_38 = arith.constant 0 : index
    %96 = vector.load %arg17[%c0_35, %c0_36, %c2, %c0_37, %c0_38] : memref<1x1x4x8x8xf32, #tpu.memory_space<vmem>>, vector<1x1x1x8x8xf32>
    %97 = vector.shape_cast %96 : vector<1x1x1x8x8xf32> to vector<8x8xf32>
    %98 = vector.shape_cast %95 : vector<8x8xf32> to vector<1x1x1x8x8xf32>
    tpu.vector_store %arg17[%c0_35, %c0_36, %c2, %c0_37, %c0_38], %98 {strides = array<i32>} : memref<1x1x4x8x8xf32, #tpu.memory_space<vmem>>, vector<1x1x1x8x8xf32>,
    %99 = arith.truncf %95 : vector<8x8xf32> to vector<8x8xbf16>
    %cst_39 = arith.constant dense<0.000000e+00> : vector<8x8xf32>
    %100 = tpu.matmul %99, %80, %cst_39 {dimension_numbers = #tpu.dot_dimension_numbers<[1], [0], [0], [1], [0, 0, 1, 1], [], []>} : vector<8x8xbf16>, vector<8x8xbf16>, vector<8x8xf32> -> vector<8x8xf32>
    %101 = vector.extract_strided_slice %20 {offsets = [0, 24], sizes = [8, 8], strides = [1, 1]} : vector<8x32xf32> to vector<8x8xf32>
    %102 = arith.truncf %101 : vector<8x8xf32> to vector<8x8xbf16>
    %103 = vector.extract_strided_slice %21 {offsets = [0, 24], sizes = [8, 8], strides = [1, 1]} : vector<8x32xf32> to vector<8x8xf32>
    %104 = arith.truncf %103 : vector<8x8xf32> to vector<8x8xbf16>
    %105 = vector.extract_strided_slice %22 {offsets = [0, 24], sizes = [8, 8], strides = [1, 1]} : vector<8x32xf32> to vector<8x8xf32>
    %106 = arith.truncf %105 : vector<8x8xf32> to vector<8x8xbf16>
    %cst_40 = arith.constant dense<0.000000e+00> : vector<8x8xf32>
    %107 = tpu.matmul %102, %104, %cst_40 {dimension_numbers = #tpu.dot_dimension_numbers<[1], [1], [0], [0], [0, 0, 1, 0], [], []>} : vector<8x8xbf16>, vector<8x8xbf16>, vector<8x8xf32> -> vector<8x8xf32>
    %108 = vector.broadcast %11 : f32 to vector<8x8xf32>
    %109 = arith.mulf %107, %108 : vector<8x8xf32>
    %110 = vector.broadcast %9 : vector<1x8xf32> to vector<8x8xf32>
    %111 = arith.addf %109, %110 : vector<8x8xf32>
    %cst_41 = arith.constant dense<0xFF800000> : vector<8xf32>
    %112 = vector.multi_reduction <maximumf>, %111, %cst_41 [1] : vector<8x8xf32> to vector<8xf32>
    %113 = vector.shape_cast %112 : vector<8xf32> to vector<8x1xf32>
    %114 = vector.broadcast %113 : vector<8x1xf32> to vector<8x8xf32>
    %115 = arith.subf %111, %114 : vector<8x8xf32>
    %116 = math.exp %115 : vector<8x8xf32>
    %cst_42 = arith.constant dense<0.000000e+00> : vector<8xf32>
    %117 = vector.multi_reduction <add>, %116, %cst_42 [1] : vector<8x8xf32> to vector<8xf32>
    %118 = vector.shape_cast %117 : vector<8xf32> to vector<8x1xf32>
    %119 = tpu.reciprocal %118 {approx = true} : vector<8x1xf32> -> vector<8x1xf32>
    %120 = vector.broadcast %119 : vector<8x1xf32> to vector<8x8xf32>
    %121 = arith.mulf %116, %120 : vector<8x8xf32>
    %c0_43 = arith.constant 0 : index
    %c0_44 = arith.constant 0 : index
    %c3 = arith.constant 3 : index
    %c0_45 = arith.constant 0 : index
    %c0_46 = arith.constant 0 : index
    %122 = vector.load %arg17[%c0_43, %c0_44, %c3, %c0_45, %c0_46] : memref<1x1x4x8x8xf32, #tpu.memory_space<vmem>>, vector<1x1x1x8x8xf32>
    %123 = vector.shape_cast %122 : vector<1x1x1x8x8xf32> to vector<8x8xf32>
    %124 = vector.shape_cast %121 : vector<8x8xf32> to vector<1x1x1x8x8xf32>
    tpu.vector_store %arg17[%c0_43, %c0_44, %c3, %c0_45, %c0_46], %124 {strides = array<i32>} : memref<1x1x4x8x8xf32, #tpu.memory_space<vmem>>, vector<1x1x1x8x8xf32>,
    %125 = arith.truncf %121 : vector<8x8xf32> to vector<8x8xbf16>
    %cst_47 = arith.constant dense<0.000000e+00> : vector<8x8xf32>
    %126 = tpu.matmul %125, %106, %cst_47 {dimension_numbers = #tpu.dot_dimension_numbers<[1], [0], [0], [1], [0, 0, 1, 1], [], []>} : vector<8x8xbf16>, vector<8x8xbf16>, vector<8x8xf32> -> vector<8x8xf32>
    %127 = tpu.concatenate %48, %74, %100, %126 in 1 : vector<8x8xf32>, vector<8x8xf32>, vector<8x8xf32>, vector<8x8xf32> -> vector<8x32xf32>
    %128 = arith.truncf %127 : vector<8x32xf32> to vector<8x32xbf16>
    %c0_48 = arith.constant 0 : index
    %c0_49 = arith.constant 0 : index
    %c0_50 = arith.constant 0 : index
    %129 = vector.load %arg6[%c0_48, %c0_49, %c0_50] : memref<1x32x32xbf16, #tpu.memory_space<vmem>>, vector<1x32x32xbf16>
    %130 = vector.shape_cast %129 : vector<1x32x32xbf16> to vector<32x32xbf16>
    %cst_51 = arith.constant dense<0.000000e+00> : vector<8x32xf32>
    %131 = tpu.matmul %128, %130, %cst_51 {dimension_numbers = #tpu.dot_dimension_numbers<[1], [0], [0], [1], [0, 0, 1, 1], [], []>} : vector<8x32xbf16>, vector<32x32xbf16>, vector<8x32xf32> -> vector<8x32xf32>
    %c0_52 = arith.constant 0 : index
    %c0_53 = arith.constant 0 : index
    %c0_54 = arith.constant 0 : index
    %132 = vector.load %arg7[%c0_52, %c0_53, %c0_54] : memref<1x1x32xf32, #tpu.memory_space<vmem>>, vector<1x1x32xf32>
    %133 = vector.shape_cast %132 : vector<1x1x32xf32> to vector<1x32xf32>
    %134 = vector.broadcast %133 : vector<1x32xf32> to vector<8x32xf32>
    %135 = arith.addf %131, %134 : vector<8x32xf32>
    %136 = arith.addf %3, %135 : vector<8x32xf32>
    %c0_55 = arith.constant 0 : index
    %c0_56 = arith.constant 0 : index
    %c0_57 = arith.constant 0 : index
    %137 = vector.load %arg8[%c0_55, %c0_56, %c0_57] : memref<1x1x32xf32, #tpu.memory_space<vmem>>, vector<1x1x32xf32>
    %138 = vector.shape_cast %137 : vector<1x1x32xf32> to vector<1x32xf32>
    %c0_58 = arith.constant 0 : index
    %c0_59 = arith.constant 0 : index
    %c0_60 = arith.constant 0 : index
    %139 = vector.load %arg9[%c0_58, %c0_59, %c0_60] : memref<1x1x32xf32, #tpu.memory_space<vmem>>, vector<1x1x32xf32>
    %140 = vector.shape_cast %139 : vector<1x1x32xf32> to vector<1x32xf32>
    %cst_61 = arith.constant dense<0.000000e+00> : vector<8xf32>
    %141 = vector.multi_reduction <add>, %136, %cst_61 [1] : vector<8x32xf32> to vector<8xf32>
    %142 = vector.shape_cast %141 : vector<8xf32> to vector<8x1xf32>
    %cst_62 = arith.constant 3.200000e+01 : f32
    %143 = vector.broadcast %cst_62 : f32 to vector<8x1xf32>
    %144 = arith.divf %142, %143 : vector<8x1xf32>
    %145 = vector.broadcast %144 : vector<8x1xf32> to vector<8x32xf32>
    %146 = arith.subf %136, %145 : vector<8x32xf32>
    %147 = arith.mulf %146, %146 : vector<8x32xf32>
    %cst_63 = arith.constant dense<0.000000e+00> : vector<8xf32>
    %148 = vector.multi_reduction <add>, %147, %cst_63 [1] : vector<8x32xf32> to vector<8xf32>
    %149 = vector.shape_cast %148 : vector<8xf32> to vector<8x1xf32>
    %cst_64 = arith.constant 3.200000e+01 : f32
    %150 = vector.broadcast %cst_64 : f32 to vector<8x1xf32>
    %151 = arith.divf %149, %150 : vector<8x1xf32>
    %152 = vector.broadcast %144 : vector<8x1xf32> to vector<8x32xf32>
    %153 = arith.subf %136, %152 : vector<8x32xf32>
    %cst_65 = arith.constant 9.99999974E-6 : f32
    %154 = vector.broadcast %cst_65 : f32 to vector<8x1xf32>
    %155 = arith.addf %151, %154 : vector<8x1xf32>
    %156 = math.rsqrt %155 : vector<8x1xf32>
    %157 = vector.broadcast %156 : vector<8x1xf32> to vector<8x32xf32>
    %158 = arith.mulf %153, %157 : vector<8x32xf32>
    %159 = vector.broadcast %138 : vector<1x32xf32> to vector<8x32xf32>
    %160 = arith.mulf %158, %159 : vector<8x32xf32>
    %161 = vector.broadcast %140 : vector<1x32xf32> to vector<8x32xf32>
    %162 = arith.addf %160, %161 : vector<8x32xf32>
    %163 = arith.truncf %162 : vector<8x32xf32> to vector<8x32xbf16>
    %c0_66 = arith.constant 0 : index
    %c0_67 = arith.constant 0 : index
    %c0_68 = arith.constant 0 : index
    %164 = vector.load %arg10[%c0_66, %c0_67, %c0_68] : memref<1x32x64xbf16, #tpu.memory_space<vmem>>, vector<1x32x64xbf16>
    %165 = vector.shape_cast %164 : vector<1x32x64xbf16> to vector<32x64xbf16>
    %cst_69 = arith.constant dense<0.000000e+00> : vector<8x64xf32>
    %166 = tpu.matmul %163, %165, %cst_69 {dimension_numbers = #tpu.dot_dimension_numbers<[1], [0], [0], [1], [0, 0, 1, 1], [], []>} : vector<8x32xbf16>, vector<32x64xbf16>, vector<8x64xf32> -> vector<8x64xf32>
    %c0_70 = arith.constant 0 : index
    %c0_71 = arith.constant 0 : index
    %c0_72 = arith.constant 0 : index
    %167 = vector.load %arg11[%c0_70, %c0_71, %c0_72] : memref<1x1x64xf32, #tpu.memory_space<vmem>>, vector<1x1x64xf32>
    %168 = vector.shape_cast %167 : vector<1x1x64xf32> to vector<1x64xf32>
    %169 = vector.broadcast %168 : vector<1x64xf32> to vector<8x64xf32>
    %170 = arith.addf %166, %169 : vector<8x64xf32>
    %cst_73 = arith.constant 5.000000e-01 : f32
    %171 = vector.broadcast %cst_73 : f32 to vector<8x64xf32>
    %172 = arith.mulf %171, %170 : vector<8x64xf32>
    %cst_74 = arith.constant 4.471500e-02 : f32
    %173 = vector.broadcast %cst_74 : f32 to vector<8x64xf32>
    %174 = arith.mulf %173, %170 : vector<8x64xf32>
    %175 = arith.mulf %174, %170 : vector<8x64xf32>
    %176 = arith.mulf %175, %170 : vector<8x64xf32>
    %177 = arith.addf %170, %176 : vector<8x64xf32>
    %cst_75 = arith.constant 0.797884583 : f32
    %178 = vector.broadcast %cst_75 : f32 to vector<8x64xf32>
    %179 = arith.mulf %178, %177 : vector<8x64xf32>
    %180 = math.tanh %179 : vector<8x64xf32>
    %cst_76 = arith.constant 1.000000e+00 : f32
    %181 = vector.broadcast %cst_76 : f32 to vector<8x64xf32>
    %182 = arith.addf %181, %180 : vector<8x64xf32>
    %183 = arith.mulf %172, %182 : vector<8x64xf32>
    %184 = arith.truncf %183 : vector<8x64xf32> to vector<8x64xbf16>
    %c0_77 = arith.constant 0 : index
    %c0_78 = arith.constant 0 : index
    %c0_79 = arith.constant 0 : index
    %185 = vector.load %arg12[%c0_77, %c0_78, %c0_79] : memref<1x64x32xbf16, #tpu.memory_space<vmem>>, vector<1x64x32xbf16>
    %186 = vector.shape_cast %185 : vector<1x64x32xbf16> to vector<64x32xbf16>
    %cst_80 = arith.constant dense<0.000000e+00> : vector<8x32xf32>
    %187 = tpu.matmul %184, %186, %cst_80 {dimension_numbers = #tpu.dot_dimension_numbers<[1], [0], [0], [1], [0, 0, 1, 1], [], []>} : vector<8x64xbf16>, vector<64x32xbf16>, vector<8x32xf32> -> vector<8x32xf32>
    %c0_81 = arith.constant 0 : index
    %c0_82 = arith.constant 0 : index
    %c0_83 = arith.constant 0 : index
    %188 = vector.load %arg13[%c0_81, %c0_82, %c0_83] : memref<1x1x32xf32, #tpu.memory_space<vmem>>, vector<1x1x32xf32>
    %189 = vector.shape_cast %188 : vector<1x1x32xf32> to vector<1x32xf32>
    %190 = vector.broadcast %189 : vector<1x32xf32> to vector<8x32xf32>
    %191 = arith.addf %187, %190 : vector<8x32xf32>
    %192 = arith.addf %191, %162 : vector<8x32xf32>
    %c0_84 = arith.constant 0 : index
    %c0_85 = arith.constant 0 : index
    %c0_86 = arith.constant 0 : index
    %193 = vector.load %arg14[%c0_84, %c0_85, %c0_86] : memref<1x1x32xf32, #tpu.memory_space<vmem>>, vector<1x1x32xf32>
    %194 = vector.shape_cast %193 : vector<1x1x32xf32> to vector<1x32xf32>
    %c0_87 = arith.constant 0 : index
    %c0_88 = arith.constant 0 : index
    %c0_89 = arith.constant 0 : index
    %195 = vector.load %arg15[%c0_87, %c0_88, %c0_89] : memref<1x1x32xf32, #tpu.memory_space<vmem>>, vector<1x1x32xf32>
    %196 = vector.shape_cast %195 : vector<1x1x32xf32> to vector<1x32xf32>
    %cst_90 = arith.constant dense<0.000000e+00> : vector<8xf32>
    %197 = vector.multi_reduction <add>, %192, %cst_90 [1] : vector<8x32xf32> to vector<8xf32>
    %198 = vector.shape_cast %197 : vector<8xf32> to vector<8x1xf32>
    %cst_91 = arith.constant 3.200000e+01 : f32
    %199 = vector.broadcast %cst_91 : f32 to vector<8x1xf32>
    %200 = arith.divf %198, %199 : vector<8x1xf32>
    %201 = vector.broadcast %200 : vector<8x1xf32> to vector<8x32xf32>
    %202 = arith.subf %192, %201 : vector<8x32xf32>
    %203 = arith.mulf %202, %202 : vector<8x32xf32>
    %cst_92 = arith.constant dense<0.000000e+00> : vector<8xf32>
    %204 = vector.multi_reduction <add>, %203, %cst_92 [1] : vector<8x32xf32> to vector<8xf32>
    %205 = vector.shape_cast %204 : vector<8xf32> to vector<8x1xf32>
    %cst_93 = arith.constant 3.200000e+01 : f32
    %206 = vector.broadcast %cst_93 : f32 to vector<8x1xf32>
    %207 = arith.divf %205, %206 : vector<8x1xf32>
    %208 = vector.broadcast %200 : vector<8x1xf32> to vector<8x32xf32>
    %209 = arith.subf %192, %208 : vector<8x32xf32>
    %cst_94 = arith.constant 9.99999974E-6 : f32
    %210 = vector.broadcast %cst_94 : f32 to vector<8x1xf32>
    %211 = arith.addf %207, %210 : vector<8x1xf32>
    %212 = math.rsqrt %211 : vector<8x1xf32>
    %213 = vector.broadcast %212 : vector<8x1xf32> to vector<8x32xf32>
    %214 = arith.mulf %209, %213 : vector<8x32xf32>
    %215 = vector.broadcast %194 : vector<1x32xf32> to vector<8x32xf32>
    %216 = arith.mulf %214, %215 : vector<8x32xf32>
    %217 = vector.broadcast %196 : vector<1x32xf32> to vector<8x32xf32>
    %218 = arith.addf %216, %217 : vector<8x32xf32>
    %c0_95 = arith.constant 0 : index
    %c0_96 = arith.constant 0 : index
    %219 = vector.load %arg18[%c0_95, %c0_96] : memref<8x32xf32, #tpu.memory_space<vmem>>, vector<8x32xf32>
    tpu.vector_store %arg18[%c0_95, %c0_96], %218 {strides = array<i32>} : memref<8x32xf32, #tpu.memory_space<vmem>>, vector<8x32xf32>,
    %c0_97 = arith.constant 0 : index
    %c0_98 = arith.constant 0 : index
    %c0_99 = arith.constant 0 : index
    %c0_100 = arith.constant 0 : index
    %220 = vector.load %arg16[%c0_97, %c0_98, %c0_99, %c0_100] : memref<1x1x8x32xf32, #tpu.memory_space<vmem>>, vector<1x1x8x32xf32>
    %221 = vector.shape_cast %220 : vector<1x1x8x32xf32> to vector<8x32xf32>
    %222 = vector.shape_cast %218 : vector<8x32xf32> to vector<1x1x8x32xf32>
    tpu.vector_store %arg16[%c0_97, %c0_98, %c0_99, %c0_100], %222 {strides = array<i32>} : memref<1x1x8x32xf32, #tpu.memory_space<vmem>>, vector<1x1x8x32xf32>,
    return
  }
  func.func @transform_0(%arg0: i32, %arg1: i32) -> (i32, i32, i32) {
    %c0_i32 = arith.constant 0 : i32
    %c0_i32_0 = arith.constant 0 : i32
    %c0_i32_1 = arith.constant 0 : i32
    return %arg0, %c0_i32, %c0_i32_0 : i32, i32, i32
  }
  func.func @transform_1(%arg0: i32, %arg1: i32) -> (i32, i32, i32) {
    %c0_i32 = arith.constant 0 : i32
    %c0_i32_0 = arith.constant 0 : i32
    %c0_i32_1 = arith.constant 0 : i32
    return %arg0, %c0_i32, %c0_i32_0 : i32, i32, i32
  }
  func.func @transform_2(%arg0: i32, %arg1: i32) -> (i32, i32, i32) {
    %c0_i32 = arith.constant 0 : i32
    %c0_i32_0 = arith.constant 0 : i32
    %c0_i32_1 = arith.constant 0 : i32
    return %arg1, %c0_i32, %c0_i32_0 : i32, i32, i32
  }
  func.func @transform_3(%arg0: i32, %arg1: i32) -> (i32, i32, i32) {
    %c0_i32 = arith.constant 0 : i32
    %c0_i32_0 = arith.constant 0 : i32
    %c0_i32_1 = arith.constant 0 : i32
    return %arg1, %c0_i32, %c0_i32_0 : i32, i32, i32
  }
  func.func @transform_4(%arg0: i32, %arg1: i32) -> (i32, i32, i32) {
    %c0_i32 = arith.constant 0 : i32
    %c0_i32_0 = arith.constant 0 : i32
    %c0_i32_1 = arith.constant 0 : i32
    return %arg1, %c0_i32, %c0_i32_0 : i32, i32, i32
  }
  func.func @transform_5(%arg0: i32, %arg1: i32) -> (i32, i32, i32) {
    %c0_i32 = arith.constant 0 : i32
    %c0_i32_0 = arith.constant 0 : i32
    %c0_i32_1 = arith.constant 0 : i32
    return %arg1, %c0_i32, %c0_i32_0 : i32, i32, i32
  }
  func.func @transform_6(%arg0: i32, %arg1: i32) -> (i32, i32, i32) {
    %c0_i32 = arith.constant 0 : i32
    %c0_i32_0 = arith.constant 0 : i32
    %c0_i32_1 = arith.constant 0 : i32
    return %arg1, %c0_i32, %c0_i32_0 : i32, i32, i32
  }
  func.func @transform_7(%arg0: i32, %arg1: i32) -> (i32, i32, i32) {
    %c0_i32 = arith.constant 0 : i32
    %c0_i32_0 = arith.constant 0 : i32
    %c0_i32_1 = arith.constant 0 : i32
    return %arg1, %c0_i32, %c0_i32_0 : i32, i32, i32
  }
  func.func @transform_8(%arg0: i32, %arg1: i32) -> (i32, i32, i32) {
    %c0_i32 = arith.constant 0 : i32
    %c0_i32_0 = arith.constant 0 : i32
    %c0_i32_1 = arith.constant 0 : i32
    return %arg1, %c0_i32, %c0_i32_0 : i32, i32, i32
  }
  func.func @transform_9(%arg0: i32, %arg1: i32) -> (i32, i32, i32) {
    %c0_i32 = arith.constant 0 : i32
    %c0_i32_0 = arith.constant 0 : i32
    %c0_i32_1 = arith.constant 0 : i32
    return %arg1, %c0_i32, %c0_i32_0 : i32, i32, i32
  }
  func.func @transform_10(%arg0: i32, %arg1: i32) -> (i32, i32, i32) {
    %c0_i32 = arith.constant 0 : i32
    %c0_i32_0 = arith.constant 0 : i32
    %c0_i32_1 = arith.constant 0 : i32
    return %arg1, %c0_i32, %c0_i32_0 : i32, i32, i32
  }
  func.func @transform_11(%arg0: i32, %arg1: i32) -> (i32, i32, i32) {
    %c0_i32 = arith.constant 0 : i32
    %c0_i32_0 = arith.constant 0 : i32
    %c0_i32_1 = arith.constant 0 : i32
    return %arg1, %c0_i32, %c0_i32_0 : i32, i32, i32
  }
  func.func @transform_12(%arg0: i32, %arg1: i32) -> (i32, i32, i32) {
    %c0_i32 = arith.constant 0 : i32
    %c0_i32_0 = arith.constant 0 : i32
    %c0_i32_1 = arith.constant 0 : i32
    return %arg1, %c0_i32, %c0_i32_0 : i32, i32, i32
  }
  func.func @transform_13(%arg0: i32, %arg1: i32) -> (i32, i32, i32) {
    %c0_i32 = arith.constant 0 : i32
    %c0_i32_0 = arith.constant 0 : i32
    %c0_i32_1 = arith.constant 0 : i32
    return %arg1, %c0_i32, %c0_i32_0 : i32, i32, i32
  }
  func.func @transform_14(%arg0: i32, %arg1: i32) -> (i32, i32, i32, i32) {
    %c0_i32 = arith.constant 0 : i32
    %c0_i32_0 = arith.constant 0 : i32
    %c0_i32_1 = arith.constant 0 : i32
    return %arg1, %arg0, %c0_i32, %c0_i32_0 : i32, i32, i32, i32
  }
  func.func @transform_15(%arg0: i32, %arg1: i32) -> (i32, i32, i32, i32, i32) {
    %c0_i32 = arith.constant 0 : i32
    %c0_i32_0 = arith.constant 0 : i32
    %c0_i32_1 = arith.constant 0 : i32
    %c0_i32_2 = arith.constant 0 : i32
    return %arg1, %arg0, %c0_i32, %c0_i32_0, %c0_i32_1 : i32, i32, i32, i32, i32
  }
}

</mosaic_0001>

<bundles_post_ra>
// kernel: tpu_custom_call.1
= control target key start
LH: loop header
LB: loop body
LE: loop exit
PB: predicated region body
PF: predicated region fallthrough
CT: control target
= control target key end

     0   :  { %s3507_s0 = inlined_call_operand.hbm [shape: f32[2,8,32], index: 0, kind: input, shape index: {}]   ;;  %s3508_s1 = inlined_call_operand.vmem [shape: f32[2,1,8], index: 1, kind: input, shape index: {}]   ;;  %s3509_s2 = inlined_call_operand.vmem [shape: bf16[2,32,96], index: 2, kind: input, shape index: {}]   ;;  %s3510_s3 = inlined_call_operand.vmem [shape: f32[2,1,96], index: 3, kind: input, shape index: {}]   ;;  %s3511_s4 = inlined_call_operand.vmem [shape: bf16[2,32,32], index: 4, kind: input, shape index: {}]   ;;  %s3512_s5 = inlined_call_operand.hbm [shape: f32[2,1,32], index: 5, kind: input, shape index: {}]   ;;  %s3513_s6 = inlined_call_operand.hbm [shape: f32[2,1,32], index: 6, kind: input, shape index: {}]   ;;  %s3514_s7 = inlined_call_operand.hbm [shape: f32[2,1,32], index: 7, kind: input, shape index: {}]   ;;  %s3515_s8 = inlined_call_operand.vmem [shape: bf16[2,32,64], index: 8, kind: input, shape index: {}]   ;;  %s3516_s9 = inlined_call_operand.hbm [shape: f32[2,1,64], index: 9, kind: input, shape index: {}]   ;;  %s3517_s10 = inlined_call_operand.vmem [shape: bf16[2,64,32], index: 10, kind: input, shape index: {}]   ;;  %s3518_s11 = inlined_call_operand.vmem [shape: f32[2,1,32], index: 11, kind: input, shape index: {}]   ;;  %s3519_s12 = inlined_call_operand.vmem [shape: f32[2,1,32], index: 12, kind: input, shape index: {}]   ;;  %s3520_s13 = inlined_call_operand.vmem [shape: f32[2,1,32], index: 13, kind: input, shape index: {}]   ;;  %s3521_s14 = inlined_call_operand.hbm [shape: f32[2,2,8,32], index: 14, kind: output, shape index: {0}]   ;;  %s3522_s15 = inlined_call_operand.hbm [shape: f32[2,2,4,8,8], index: 15, kind: output, shape index: {1}]  }
   0x1   :  { %3558 = sst [smem:[#allocation41_spill]] %s3507_s0 }
   0x2   :  { %3559 = sst [smem:[#allocation42_spill]] %s3508_s1 }
   0x3   :  { %3560 = sst [smem:[#allocation43_spill]] %s3509_s2 }
   0x4   :  { %3561 = sst [smem:[#allocation44_spill]] %s3510_s3 }
   0x5   :  { %3562 = sst [smem:[#allocation45_spill]] %s3511_s4 }
   0x6   :  { %3563 = sst [smem:[#allocation46_spill]] %s3512_s5 }
   0x7   :  { %3564 = sst [smem:[#allocation47_spill]] %s3513_s6 }
   0x8   :  { %3565 = sst [smem:[#allocation48_spill]] %s3514_s7 }
   0x9   :  { %3566 = sst [smem:[#allocation49_spill]] %s3515_s8 }
   0xa   :  { %3567 = sst [smem:[#allocation50_spill]] %s3516_s9 }
   0xb   :  { %3568 = sst [smem:[#allocation51_spill]] %s3517_s10 }
   0xc   :  { %3569 = sst [smem:[#allocation52_spill]] %s3518_s11 }
   0xd   :  { %3570 = sst [smem:[#allocation53_spill]] %s3519_s12 }
   0xe   :  { %3571 = sst [smem:[#allocation54_spill]] %s3520_s13 }
   0xf   :  { %3572 = sst [smem:[#allocation55_spill]] %s3521_s14 }
  0x10   :  { %3573 = sst [smem:[#allocation56_spill]] %s3522_s15 }
  0x11   :  { %21 = vsyncpa [#allocation4], 0 }
  0x12   :  { %23 = vsyncpa [#allocation4 + $0x1], 0 }
  0x13   :  { %24 = vsyncpa [#allocation7], 0 }
  0x14   :  { %26 = vsyncpa [#allocation7 + $0x1], 0 }
  0x15   :  { %27 = vsyncpa [#allocation10], 0 }
  0x16   :  { %29 = vsyncpa [#allocation10 + $0x1], 0 }
  0x17   :  { %30 = vsyncpa [#allocation5], 0 }
  0x18   :  { %32 = vsyncpa [#allocation5 + $0x1], 0 }
  0x19   :  { %33 = vsyncpa [#allocation14], 0 }
  0x1a   :  { %35 = vsyncpa [#allocation14 + $0x1], 0  ;;  %s2816_s18 = smov 0   ;;  %s2818_s19 = smov 0  }
  0x1b   :  { %s2820_s20 = smov 0   ;;  %s2822_s21 = smov 0  }
  0x1c   :  { %s2824_s22 = smov 0   ;;  %s2826_s23 = smov 0  }
  0x1d   :  { %s2828_s24 = smov 0   ;;  %s2830_s25 = smov 0  }
  0x1e   :  { %s2832_s26 = smov 0   ;;  %s2834_s27 = smov 0  }
  0x1f   :  { %s2836_s28 = smov 0   ;;  %s2838_s29 = smov 0  }
  0x20   :  { %s2840_s30 = smov 0   ;;  %s2842_s16 = smov 0  }
  0x21 LB: > { %3574 = sst [smem:[#allocation20_spill]] %s2658_s18  ;;  %s50_s17 = sadd.s32 1, %s2702_s29  ;;  %s2710_s16 = sphi %s2842_s16, %s41_s16   ;;  %s2706_s30 = sphi %s2840_s30, %s3672_s30   ;;  %s2702_s29 = sphi %s2838_s29, %s3671_s29   ;;  %s2698_s28 = sphi %s2836_s28, %s3675_s28   ;;  %s2694_s27 = sphi %s2834_s27, %s3669_s27   ;;  %s2690_s26 = sphi %s2832_s26, %s3668_s26   ;;  %s2686_s25 = sphi %s2830_s25, %s3667_s25   ;;  %s2682_s24 = sphi %s2828_s24, %s3674_s24   ;;  %s2678_s23 = sphi %s2826_s23, %s3665_s23   ;;  %s2674_s22 = sphi %s2824_s22, %s3664_s22   ;;  %s2670_s21 = sphi %s2822_s21, %s3663_s21   ;;  %s2666_s20 = sphi %s2820_s20, %s3662_s20   ;;  %s2662_s19 = sphi %s2818_s19, %s3661_s19   ;;  %s2658_s18 = sphi %s2816_s18, %s3660_s18  }
  0x22   : > { %3575 = sst [smem:[#allocation21_spill]] %s2662_s19  ;;  %p3533_p0 = scmp.eq.s32.totalorder %s2710_s16, 0 }
  0x23   : > { %3576 = sst [smem:[#allocation22_spill]] %s2666_s20  ;;  %p2888_p1 = scmp.ge.s32.totalorder %s50_s17, 2 }
  0x24   : > { %3577 = sst [smem:[#allocation23_spill]] %s2674_s22  ;;  %s190_s15 = sadd.s32 1, %s2678_s23 }
  0x25   : > { %3578 = sst [smem:[#allocation24_spill]] %s2678_s23  ;;  %p197_p2 = scmp.ne.s32.totalorder %s2678_s23, %s2674_s22 }
  0x26   : > { %3579 = sst [smem:[#allocation25_spill]] %s2686_s25  ;;  %s3677_s17 = smov (%p2888_p1, %s50_s17), 0 }
  0x27   : > { %3580 = sst [smem:[#allocation26_spill]] %s2690_s26  ;;  %p199_p4 = por %p197_p2, %p3533_p0 }
  0x28   : > { %3581 = sst [smem:[#allocation27_spill]] %s2694_s27  ;;  %s2905_s13 = ssub.s32 %s2702_s29, %s3677_s17 }
  0x29   : > { %3582 = sst [smem:[#allocation28_spill]] %s2698_s28  ;;  %p3532_p5 = scmp.lt.s32.totalorder %s2710_s16, 4 }
  0x2a   : > { %3583 = sst [smem:[#allocation29_spill]] %s2702_s29  ;;  %p188_p6 = scmp.eq.s32.totalorder %s2905_s13, 0 }
  0x2b   : > { %3584 = sst [smem:[#allocation30_spill]] %s2706_s30  ;;  %s3534_s12 = sand.u32 1, %s2710_s16  }
  0x2c   : > { %3585 = sst [smem:[#allocation31_spill]] %s2710_s16  ;;  %s2911_s11 = sand.u32 1, %s2678_s23  }
  0x2d   : > { %s3586_s14 = scalar_select %p2888_p1, 1, 0 }
  0x2e   : > { %3587 = sst [smem:[#allocation32_spill]] %s3677_s17  ;;  %s2917_s8 = sshll.u32 %s2702_s29, 4 }
  0x2f   : > { %s2914_s10 = scalar_select %p188_p6, %s2678_s23, %s190_s15  }
  0x30   : > { %s3589_s5 = sld [smem:[#allocation46_spill]]  ;;  %s540_s17 = scalar_lea.vmem [#allocation6], %s2911_s11 }
  0x31   : > { %3588 = sst [smem:[#allocation33_spill]] %s2914_s10  ;;  %s547_s1 = sshll.u32 %s540_s17, 4  ;;  %s2926_s1 = int_to_ptr.vmem [resolvable:$true] %s547_s1 }
  0x32   : > { %p2930_p7 = pnand %p3532_p5, %p199_p4  ;;  %s2938_s2 = scalar_lea.sflag [#allocation7], %s3534_s12 }
  0x33   : > { %3591 = sst [smem:[#allocation34_spill]] %s2938_s2 }
  0x34   : > { %s3590_s15 = scalar_select %p2930_p7, 1, 0 }
  0x35   : > { %p2944_p11 = pneg %p2930_p7 }
  0x36   : > { %s2923_s3 = scalar_lea.hbm %s3589_s5, %s2917_s8  ;;  %s2379_s23 = scalar_lea.hbm %s3589_s5, 32 }
  0x37   : > { %s2374_s4 = scalar_lea.hbm %s2923_s3, 16  ;;  %p2380_p2 = scmp.lt.u32.totalorder %s2923_s3, %s3589_s5 }
  0x38   : > { %p2375_p10 = scmp.ne.s32.totalorder %s2923_s3, %s2374_s4  ;;  %p2381_p4 = scmp.lt.u32.totalorder %s2379_s23, %s2374_s4 }
  0x39   : > { %p2383_p5 = scmp.lt.u32.totalorder %s2374_s4, %s2923_s3 }
  0x3a   : > { %p2377_p12 = pnand %p2944_p11, %p2375_p10  ;;  %p2382_p6 = por %p2381_p4, %p2380_p2 }
  0x3c   : > { %p2378_p13 = pneg %p2377_p12  ;;  %p2384_p3 = por %p2383_p5, %p2382_p6 }
  0x3e   : > { %p2385_p0 = pnand %p2384_p3, %p2378_p13 }
  0x40   : > { %2388 = shalt.err (!%p2385_p0)
}
  0x41   : > { %s2389_s12 = scalar_lea.vmem %s2926_s1, 16  ;;  %s2712_s10 = smov [#allocation6]  }
  0x42   : > { %p2390_p10 = scmp.ne.s32.totalorder %s2926_s1, %s2389_s12  ;;  %s2394_s17 = sshll.u32 %s2712_s10, 4  ;;  %s2395_s17 = int_to_ptr.vmem [resolvable:$false] %s2394_s17 }
  0x43   : > { %s2396_s27 = scalar_lea.vmem %s2395_s17, 32  ;;  %p2397_p9 = scmp.lt.s32.totalorder %s2926_s1, %s2395_s17 }
  0x44   : > { %p2392_p12 = pnand %p2390_p10, %p2944_p11  ;;  %p2398_p1 = scmp.lt.s32.totalorder %s2396_s27, %s2389_s12 }
  0x46   : > { %p2393_p8 = pneg %p2392_p12  ;;  %p2399_p2 = por %p2398_p1, %p2397_p9 }
  0x48   : > { %p2400_p4 = pnand %p2399_p2, %p2393_p8 }
  0x4a   : > { %2403 = shalt.err (!%p2400_p4)
}
  0x4b   : > { %2194 = dma.hbm_to_vmem [thread:$0]  (!%p2930_p7), %s2923_s3, 16, %s2926_s1, %s2938_s2  }
  0x4c   : > { %p3593_p0 = scmp.lt.s32.totalorder %s2710_s16, 5  ;;  %p3594_p3 = scmp.ge.s32.totalorder %s2710_s16, 1 }
  0x4d   : > { %s3597_s7 = sld [smem:[#allocation48_spill]]  ;;  %s574_s10 = scalar_lea.vmem [#allocation9], %s2911_s11 }
  0x4e   : > { %p2972_p5 = pnand %p3594_p3, %p3593_p0  ;;  %s581_s17 = sshll.u32 %s574_s10, 4  ;;  %s582_s17 = int_to_ptr.vmem [resolvable:$true] %s581_s17 }
  0x4f   : > { %s3598_s27 = sand.u32 1, %s2710_s16  }
  0x50   : > { %s3595_s23 = scalar_select %p2972_p5, 1, 0 }
  0x51   : > { %s2985_s1 = scalar_lea.sflag [#allocation10], %s3598_s27 }
  0x52   : > { %3596 = sst [smem:[#allocation35_spill]] %s3595_s23 }
  0x53   : > { %s2980_s4 = scalar_lea.hbm %s3597_s7, %s2917_s8  ;;  %s2409_s12 = scalar_lea.hbm %s3597_s7, 32 }
  0x54   : > { %s2404_s3 = scalar_lea.hbm %s2980_s4, 16  ;;  %p2410_p13 = scmp.lt.u32.totalorder %s2980_s4, %s3597_s7 }
  0x55   : > { %p2405_p1 = scmp.ne.s32.totalorder %s2980_s4, %s2404_s3  ;;  %p2411_p6 = scmp.lt.u32.totalorder %s2409_s12, %s2404_s3 }
  0x56   : > { %p2413_p12 = scmp.lt.u32.totalorder %s2404_s3, %s2980_s4 }
  0x57   : > { %p2407_p8 = pnand %p2405_p1, %p2944_p11  ;;  %p2412_p10 = por %p2411_p6, %p2410_p13 }
  0x59   : > { %p2408_p9 = pneg %p2407_p8  ;;  %p2414_p2 = por %p2413_p12, %p2412_p10 }
  0x5b   : > { %p2415_p4 = pnand %p2414_p2, %p2408_p9 }
  0x5d   : > { %2418 = shalt.err (!%p2415_p4)
}
  0x5e   : > { %s2419_s10 = scalar_lea.vmem %s582_s17, 16  ;;  %s2713_s27 = smov [#allocation9]  }
  0x5f   : > { %p2420_p0 = scmp.ne.s32.totalorder %s582_s17, %s2419_s10  ;;  %s2424_s2 = sshll.u32 %s2713_s27, 4  ;;  %s2425_s2 = int_to_ptr.vmem [resolvable:$false] %s2424_s2 }
  0x60   : > { %s2426_s5 = scalar_lea.vmem %s2425_s2, 32  ;;  %p2427_p8 = scmp.lt.s32.totalorder %s582_s17, %s2425_s2 }
  0x61   : > { %p2422_p3 = pnand %p2420_p0, %p2944_p11  ;;  %p2428_p5 = scmp.lt.s32.totalorder %s2426_s5, %s2419_s10 }
  0x63   : > { %p2423_p1 = pneg %p2422_p3  ;;  %p2429_p7 = por %p2428_p5, %p2427_p8 }
  0x65   : > { %p2430_p6 = pnand %p2429_p7, %p2423_p1 }
  0x67   : > { %2433 = shalt.err (!%p2430_p6)
}
  0x68   : > { %p3599_p13 = scmp.ne.s32.totalorder %s3590_s15, 0  ;;  %s3006_s9 = sadd.s32 4294967295, %s2710_s16  }
  0x69   : > { %s1992_s2 = sadd.s32 4294967294, %s2710_s16   ;;  %s53_s23 = sadd.s32 1, %s2706_s30 }
  0x6a   : > { %2200 = dma.hbm_to_vmem [thread:$0]  (!%p3599_p13), %s2980_s4, 16, %s582_s17, %s2985_s1  }
  0x6b   : > { %p3600_p7 = scmp.ne.s32.totalorder %s3586_s14, 0  ;;  %s60_s3 = sadd.s32 1, %s2690_s26 }
  0x6c   : > { %p67_p5 = scmp.ne.s32.totalorder %s2690_s26, %s2686_s25  ;;  %p73_p10 = scmp.ne.s32.totalorder %s2686_s25, %s2682_s24 }
  0x6d   : > { %s3679_s23 = smov (!%p3600_p7, %s53_s23), %s2706_s30  ;;  %p3601_p12 = scmp.eq.s32.totalorder %s2710_s16, 0 }
  0x6e   : > { %p55_p9 = scmp.ge.s32.totalorder %s3679_s23, 2  ;;  %p74_p4 = scmp.eq.s32.totalorder %s3006_s9, 0 }
  0x6f   : > { %p3020_p2 = por %p3601_p12, %p67_p5  ;;  %p3605_p3 = scmp.ne.s32.totalorder %s2674_s22, %s2670_s21 }
  0x70   : > { %s3681_s23 = smov (%p55_p9, %s3679_s23), 0  ;;  %p3027_p0 = por %p74_p4, %p73_p10 }
  0x71   : > { %3603 = sst [smem:[#allocation36_spill]] %s3681_s23  ;;  %p3034_p1 = por %p3605_p3, %p74_p4 }
  0x72   : > { %s3604_s14 = scalar_select %p3027_p0, 1, 0 }
  0x73   : > { %s3606_s17 = scalar_select %p3034_p1, 1, 0 }
  0x74   : > { %s57_s24 = ssub.s32 %s2706_s30, %s3681_s23  ;;  %s426_s12 = sadd.s32 1, %s2666_s20 }
  0x75   : > { %p58_p8 = scmp.eq.s32.totalorder %s57_s24, 0  ;;  %s423_s28 = sor.u32 %s2905_s13, %s57_s24 }
  0x76   : > { %p424_p6 = scmp.eq.s32.totalorder %s423_s28, 0  ;;  %p436_p7 = scmp.ne.s32.totalorder %s2666_s20, %s2662_s19 }
  0x77   : > { %s3045_s10 = scalar_select %p58_p8, %s2690_s26, %s60_s3  }
  0x78   : > { %s3048_s27 = scalar_select %p424_p6, %s2666_s20, %s426_s12  }
  0x79   : > { %3607 = sst [smem:[#allocation37_spill]] %s3045_s10  ;;  %p437_p5 = scmp.eq.s32.totalorder %s3006_s9, 3 }
  0x7a   : > { %3608 = sst [smem:[#allocation38_spill]] %s3048_s27  ;;  %p442_p9 = scmp.ne.s32.totalorder %s2662_s19, %s2658_s18 }
  0x7b   : > { %p443_p10 = scmp.eq.s32.totalorder %s1992_s2, 3  ;;  %s491_s21 = sand.u32 1, %s2690_s26  }
  0x7c   : > { %p3054_p12 = por %p437_p5, %p436_p7  ;;  %s1995_s24 = sshll.u32 %s491_s21, 3 }
  0x7d   : > { %p3058_p4 = por %p443_p10, %p442_p9  ;;  %s1996_s28 = sshll.u32 %s2706_s30, 7 }
  0x7e   : > { %s3609_s5 = scalar_select %p3054_p12, 1, 0 }
  0x7f   : > { %s3611_s13 = scalar_select %p3058_p4, 1, 0 }
  0x80   : > { %3610 = sst [smem:[#allocation39_spill]] %s3609_s5  ;;  %s3613_s0 = sld [smem:[#allocation41_spill]] }
  0x81   : > { %3612 = sst [smem:[#allocation40_spill]] %s3611_s13  ;;  %s495_s2 = scalar_lea.vmem [#allocation3], %s1995_s24 }
  0x82   : > { %s502_s12 = sshll.u32 %s495_s2, 4  ;;  %p3614_p3 = scmp.lt.s32.totalorder %s2710_s16, 4  ;;  %s3068_s12 = int_to_ptr.vmem [resolvable:$true] %s502_s12 }
  0x83   : > { %s3616_s6 = sld [smem:[#allocation47_spill]]  ;;  %s492_s24 = scalar_lea.sflag [#allocation4], %s491_s21 }
  0x84   : > { %p3074_p8 = pnand %p3614_p3, %p3020_p2 }
  0x86   : > { %s3066_s23 = scalar_lea.hbm %s3613_s0, %s1996_s28  ;;  %s557_s28 = scalar_lea.vmem [#allocation8], %s2911_s11 }
  0x87   : > { %s3085_s3 = sshll.u32 %s557_s28, 4  ;;  %s2434_s2 = scalar_lea.hbm %s3066_s23, 128  ;;  %s565_s3 = int_to_ptr.vmem [resolvable:$true] %s3085_s3 }
  0x88   : > { %p2435_p6 = scmp.ne.s32.totalorder %s3066_s23, %s2434_s2  ;;  %p2436_p7 = pneg %p3074_p8 }
  0x89   : > { %s3082_s7 = scalar_lea.hbm %s3616_s6, %s2917_s8  ;;  %s2439_s26 = scalar_lea.hbm %s3613_s0, 256 }
  0x8a   : > { %p2437_p2 = pnand %p2436_p7, %p2435_p6  ;;  %p2440_p9 = scmp.lt.u32.totalorder %s3066_s23, %s3613_s0 }
  0x8b   : > { %p2441_p10 = scmp.lt.u32.totalorder %s2439_s26, %s2434_s2  ;;  %p2443_p4 = scmp.lt.u32.totalorder %s2434_s2, %s3066_s23 }
  0x8c   : > { %p2438_p5 = pneg %p2437_p2 }
  0x8d   : > { %p2442_p3 = por %p2441_p10, %p2440_p9 }
  0x8f   : > { %p2444_p12 = por %p2443_p4, %p2442_p3 }
  0x91   : > { %p2445_p1 = pnand %p2444_p12, %p2438_p5 }
  0x93   : > { %2448 = shalt.err (!%p2445_p1)
}
  0x94   : > { %s2449_s21 = scalar_lea.vmem %s3068_s12, 128  ;;  %s2714_s27 = smov [#allocation3]  }
  0x95   : > { %p2450_p6 = scmp.ne.s32.totalorder %s3068_s12, %s2449_s21  ;;  %s2454_s28 = sshll.u32 %s2714_s27, 4  ;;  %s2455_s28 = int_to_ptr.vmem [resolvable:$false] %s2454_s28 }
  0x96   : > { %s2456_s20 = scalar_lea.vmem %s2455_s28, 256  ;;  %p2457_p13 = scmp.lt.s32.totalorder %s3068_s12, %s2455_s28 }
  0x97   : > { %p2452_p2 = pnand %p2450_p6, %p2436_p7  ;;  %p2458_p9 = scmp.lt.s32.totalorder %s2456_s20, %s2449_s21 }
  0x99   : > { %p2453_p0 = pneg %p2452_p2  ;;  %p2459_p10 = por %p2458_p9, %p2457_p13 }
  0x9b   : > { %p2460_p4 = pnand %p2459_p10, %p2453_p0 }
  0x9d   : > { %2463 = shalt.err (!%p2460_p4)
}
  0x9e   : > { %2191 = dma.hbm_to_vmem [thread:$0]  (!%p3074_p8), %s3066_s23, 128, %s3068_s12, %s492_s24  }
  0x9f   : > { %s2464_s2 = scalar_lea.hbm %s3082_s7, 16  ;;  %s2469_s30 = scalar_lea.hbm %s3616_s6, 32 }
  0xa0   : > { %p2465_p1 = scmp.ne.s32.totalorder %s3082_s7, %s2464_s2  ;;  %p2470_p13 = scmp.lt.u32.totalorder %s3082_s7, %s3616_s6 }
  0xa1   : > { %p2471_p0 = scmp.lt.u32.totalorder %s2469_s30, %s2464_s2  ;;  %p2473_p3 = scmp.lt.u32.totalorder %s2464_s2, %s3082_s7 }
  0xa2   : > { %p2467_p12 = pnand %p2465_p1, %p2944_p11 }
  0xa3   : > { %p2472_p5 = por %p2471_p0, %p2470_p13 }
  0xa4   : > { %p2468_p7 = pneg %p2467_p12 }
  0xa5   : > { %p2474_p6 = por %p2473_p3, %p2472_p5 }
  0xa7   : > { %p2475_p2 = pnand %p2474_p6, %p2468_p7 }
  0xa9   : > { %2478 = shalt.err (!%p2475_p2)
}
  0xaa   : > { %s2479_s23 = scalar_lea.vmem %s565_s3, 16  ;;  %s2715_s12 = smov [#allocation8]  }
  0xab   : > { %p2480_p8 = scmp.ne.s32.totalorder %s565_s3, %s2479_s23  ;;  %s2484_s24 = sshll.u32 %s2715_s12, 4  ;;  %s2485_s24 = int_to_ptr.vmem [resolvable:$false] %s2484_s24 }
  0xac   : > { %s2486_s27 = scalar_lea.vmem %s2485_s24, 32  ;;  %p2487_p4 = scmp.lt.s32.totalorder %s565_s3, %s2485_s24 }
  0xad   : > { %p2482_p9 = pnand %p2480_p8, %p2944_p11  ;;  %p2488_p1 = scmp.lt.s32.totalorder %s2486_s27, %s2479_s23 }
  0xaf   : > { %p2483_p10 = pneg %p2482_p9  ;;  %p2489_p12 = por %p2488_p1, %p2487_p4 }
  0xb1   : > { %p2490_p0 = pnand %p2489_p12, %p2483_p10 }
  0xb3   : > { %2493 = shalt.err (!%p2490_p0)
}
  0xb4   : > { %p3617_p13 = scmp.ne.s32.totalorder %s3590_s15, 0  ;;  %s3618_s28 = sld [smem:[#allocation34_spill]] }
  0xb5   : > { %s3619_s4 = sld [smem:[#allocation50_spill]]  ;;  %s599_s30 = scalar_lea.vmem [#allocation11], %s2911_s11 }
  0xb6   : > { %s606_s10 = sshll.u32 %s599_s30, 4  ;;  %s607_s10 = int_to_ptr.vmem [resolvable:$true] %s606_s10 }
  0xba   : > { %2197 = dma.hbm_to_vmem [thread:$0]  (!%p3617_p13), %s3082_s7, 16, %s565_s3, %s3618_s28  }
  0xbb   : > { %s3135_s26 = scalar_lea.hbm %s3619_s4, %s2917_s8  ;;  %s2499_s7 = scalar_lea.hbm %s3619_s4, 32 }
  0xbc   : > { %s2494_s21 = scalar_lea.hbm %s3135_s26, 16  ;;  %p2500_p6 = scmp.lt.u32.totalorder %s3135_s26, %s3619_s4 }
  0xbd   : > { %p2495_p7 = scmp.ne.s32.totalorder %s3135_s26, %s2494_s21  ;;  %p2501_p2 = scmp.lt.u32.totalorder %s2499_s7, %s2494_s21 }
  0xbe   : > { %p2503_p9 = scmp.lt.u32.totalorder %s2494_s21, %s3135_s26 }
  0xbf   : > { %p2497_p5 = pnand %p2495_p7, %p2944_p11  ;;  %p2502_p8 = por %p2501_p2, %p2500_p6 }
  0xc1   : > { %p2498_p3 = pneg %p2497_p5  ;;  %p2504_p10 = por %p2503_p9, %p2502_p8 }
  0xc3   : > { %p2505_p4 = pnand %p2504_p10, %p2498_p3 }
  0xc5   : > { %2508 = shalt.err (!%p2505_p4)
}
  0xc6   : > { %s2509_s8 = scalar_lea.vmem %s607_s10, 16  ;;  %s2716_s11 = smov [#allocation11]  }
  0xc7   : > { %p2510_p1 = scmp.ne.s32.totalorder %s607_s10, %s2509_s8  ;;  %s2514_s27 = sshll.u32 %s2716_s11, 4  ;;  %s2515_s27 = int_to_ptr.vmem [resolvable:$false] %s2514_s27 }
  0xc8   : > { %s2516_s28 = scalar_lea.vmem %s2515_s27, 32  ;;  %p2517_p7 = scmp.lt.s32.totalorder %s607_s10, %s2515_s27 }
  0xc9   : > { %p2512_p12 = pnand %p2510_p1, %p2944_p11  ;;  %p2518_p5 = scmp.lt.s32.totalorder %s2516_s28, %s2509_s8 }
  0xcb   : > { %p2513_p0 = pneg %p2512_p12  ;;  %p2519_p13 = por %p2518_p5, %p2517_p7 }
  0xcd   : > { %p2520_p2 = pnand %p2519_p13, %p2513_p0 }
  0xcf   : > { %2523 = shalt.err (!%p2520_p2)
}
  0xd0   : > { %p3620_p6 = scmp.ne.s32.totalorder %s3590_s15, 0  ;;  %s3621_s20 = sld [smem:[#allocation35_spill]] }
  0xd2   : > { %2203 = dma.hbm_to_vmem [thread:$0]  (!%p3620_p6), %s3135_s26, 16, %s607_s10, %s2985_s1  }
  0xd6   : > { %p3622_p3 = scmp.ne.s32.totalorder %s3621_s20, 0 }
  0xd7   : > { %s643_s29 = sand.u32 (!%p3622_p3), 1, %s2686_s25   ;;  %p3623_p11 = scmp.ne.s32.totalorder (!%p3622_p3), %s3604_s14, 0 }
  0xd8   : > { %641 = sbr.rel (%p3622_p3) target bundleno = 2836 (0xb14), region = 76  ;;  %s3159_s2 = sshll.u32 (!%p3622_p3), %s643_s29, 3 }
  0xd9   : > { %s644_s30 = scalar_lea.sflag (!%p3622_p3), [#allocation4], %s643_s29 }
  0xdf   : > { %2637 = dma.done.wait (%p3623_p11), %s644_s30, 128  }
  0xe0   : > { %2639 = vsyncadd (%p3623_p11), %s644_s30, 4294967168  ;;  %s652_s15 = sand.u32 1, %s3006_s9   ;;  %s3168_s1 = sand.u32 1, %s2674_s22  }
  0xe1   : > { %s653_s26 = scalar_lea.sflag [#allocation7], %s652_s15  ;;  %p3624_p13 = scmp.ne.s32.totalorder %s3606_s17, 0 }
  0xe3   : > { %2641 = dma.done.wait (%p3624_p13), %s653_s26, 32  }
  0xe4   : > { %2643 = vsyncadd (%p3624_p13), %s653_s26, 4294967264  ;;  %s669_s14 = scalar_lea.sflag [#allocation10], %s652_s15 }
  0xe5   : > { %2645 = dma.done.wait (%p3624_p13), %s669_s14, 32  }
  0xe6   : > { %2647 = vsyncadd (%p3624_p13), %s669_s14, 4294967264  ;;  %s3625_s9 = sld [smem:[#allocation28_spill]]  ;;  %s3626_s7 = sld [smem:[#allocation27_spill]] }
  0xe7   : > { %s3182_s3 = sand.u32 1, %s2662_s19   ;;  %s3629_s10 = sld [smem:[#allocation43_spill]] }
  0xe8   : > { %s2003_s24 = sshll.u32 %s3182_s3, 3  ;;  %s2004_s8 = sshll.u32 %s3182_s3, 5 }
  0xe9   : > { %s3630_s6 = sld [smem:[#allocation45_spill]]  ;;  %s3631_s22 = sld [smem:[#allocation49_spill]] }
  0xea   : > { %s3632_s18 = sld [smem:[#allocation51_spill]]  ;;  %s3633_s23 = sld [smem:[#allocation52_spill]] }
  0xeb   : > { %s3634_s0 = sld [smem:[#allocation53_spill]]  ;;  %s3635_s5 = sld [smem:[#allocation54_spill]] }
  0xec   : > { %p782_p8 = scmp.lt.s32.totalorder %s3625_s9, 1  ;;  %p785_p9 = scmp.lt.s32.totalorder %s3626_s7, 1 }
  0xed   : > { %s3237_s27 = scalar_lea.vmem [#allocation13], %s2004_s8  ;;  %p2013_p10 = scmp.ne.s32.totalorder %s3626_s7, 0 }
  0xee   : > { %s3683_s9 = smov (!%p782_p8, %s3625_s9), 1  ;;  %vm823_vm0 = vcmask (!%p2013_p10), 261120  }
  0xef   : > { %s3192_s11 = scalar_select %p785_p9, %s3626_s7, 1 }
  0xf0   : > { %821 = sbr.rel (%p2013_p10) target bundleno = 249 (0xf9), region = 100 }
  0xf1   : > { %s2056_s29 = sshll.u32 %s3192_s11, 4  ;;  %s2059_s28 = sshll.u32 %s3192_s11, 5 }
  0xf2   : > { %s789_s21 = scalar_lea.vmem %s3629_s10, %s2056_s29  ;;  %s3209_s17 = scalar_lea.vmem %s3630_s6, %s2056_s29 }
  0xf3   : > { %s3214_s19 = scalar_lea.vmem %s3631_s22, %s2056_s29  ;;  %s3220_s30 = scalar_lea.vmem %s3632_s18, %s2059_s28 }
  0xf4   : > { %s810_s10 = scalar_lea.vmem %s3633_s23, %s3192_s11  ;;  %s813_s6 = scalar_lea.vmem %s3634_s0, %s3192_s11 }
  0xf5   : > { %s816_s25 = scalar_lea.vmem %s3635_s5, %s3192_s11  ;;  %s679_s22 = scalar_lea.vmem [#allocation11], %s3168_s1 }
  0xf6   : > { %s3235_s29 = scalar_lea.vmem [#allocation12], %s2003_s24  ;;  %s3636_s18 = scalar_lea.vmem (!%p2013_p10), [#allocation3], %s3159_s2 }
  0xf7   : > { %v822_v0 = vld [vmem:[%s3636_s18] sm:$0xff] }
  0xf8   : > { %824 = vst.msk [vmem:[#allocation2] sm:$0xff] %vm823_vm0, %v822_v0 }
  0xf9 PF: > { %v2342_v1 = vld [vmem:[%s789_s21] sm:$0xff]   ;;  %v2717_v2 = vmov 0.0   ;;  %v2343_v3 = vld [vmem:[%s789_s21 + $0x8] sm:$0xff]   ;;  %vm2718_vm1 = vmmov 0   ;;  %vm853_vm2 = vcmask 261120   ;;  %s3637_s13 = sld [smem:[#allocation44_spill]]  ;;  %v950_v24 = vlaneseq }
  0xfa   : > { %2090 = vmatprep.subr.bf16.mxu0 %v2717_v2  ;;  %2098 = vmatprep.subr.bf16.mxu1 %v2717_v2  ;;  %s2719_s21 = smov 120   ;;  %s2720_s7 = smov 96   ;;  %vm901_vm3 = vcmask 64512   ;;  %vm974_vm4 = vcmask 1043456   ;;  %vm1373_vm5 = vcmask 130048   ;;  %vm1375_vm6 = vcmask 195584  }
  0xfb   : > { %2091 = vmatpush3.bf16.msra.mxu0 %v2342_v1  ;;  %2094 = vmatprep.mubr.msk.bf16.mxu0 %vm2718_vm1, %v2717_v2  ;;  %s2721_s24 = smov 80   ;;  %s2722_s8 = smov 88   ;;  %v951_v27 = vshrl.u32 %v950_v24, 7  ;;  %vm1591_vm7 = vcmask 523264  }
  0xfc   : > { %2092 = vmatprep.subr.bf16.mxu0 %v2717_v2  ;;  %2100 = vmatprep.mubr.msk.bf16.mxu1 %vm2718_vm1, %v2717_v2  ;;  %s2723_s20 = smov 72   ;;  %s2724_s14 = smov 112  }
  0xfd   : > { %s2725_s28 = smov 104   ;;  %s3639_s23 = sld [smem:[#allocation42_spill]]  ;;  %v952_v29 = vsub.s32 0, %v951_v27 }
  0xfe   : > { %s2727_s0 = smov 64   ;;  %s2728_s4 = smov 40  }
  0xff   : > { %v3246_v4 = vld [vmem:[#allocation2] sm:$0xff]  ;;  %2093 = vmatpush3.bf16.msra.mxu0 %v2343_v3  ;;  %s3638_s2 = scalar_lea.vmem %s3637_s13, %s3192_s11  ;;  %s2729_s18 = smov 48  }
 0x100   : > { %v829_v5 = vpack.c.bf16 %v3246_v4, %v3246_v4  ;;  %2104 = vmatprep.subr.bf16.mxu0 %v2717_v2  ;;  %v2014_v6 = vld [vmem:[%s3638_s2] ss:$0 sm:$0xff]  ;;  %s2730_s16 = smov 8   ;;  %s2731_s5 = smov 16  }
 0x101   : > { %s2732_s13 = smov 24   ;;  %s3642_s2 = scalar_lea.vmem [#allocation8], %s3168_s1 }
 0x102   : > { %2095 = vmatmul.mubr.msk.bf16.vlgmr.msra.gmra.mrb[0].mxu0 %vm853_vm2, %v829_v5 }
 0x103   : > { %2106 = vmatprep.mubr.msk.bf16.mxu0 %vm2718_vm1, %v2717_v2  ;;  %s3640_s12 = scalar_lea.vmem %s3639_s23, %s3683_s9  ;;  %s2726_s9 = smov 56  }
 0x104   : > { %v826_v25 = vld [vmem:[%s3640_s12] sm:$0x1]  ;;  %s3648_s23 = sld [smem:[#allocation56_spill]] }
 0x105   : > { %v827_v26 = vsub.f32 1.0, %v826_v25 }
 0x107   : > { %v828_v28 = vmul.f32 -10000.0, %v827_v26 }
 0x109   : > { %v953_v30 = vrot.slane %v828_v28, %v952_v29 }
 0x10a   : > { %s3649_s12 = smov %s3648_s23 }
 0x1d5   : > { %v891_v7 = vpop.f32.mrb[0].mxu0 }
 0x1d6   : > { %v892_v8 = vadd.f32 %v2014_v6, %v891_v7  ;;  %v2096_v9 = vpop.f32.mrb[1].mxu0 }
 0x1d7   : > { %v894_v10 = vpop.f32.mrb[2].mxu0 }
 0x1d8   : > { %v3262_v11 = vpack.c.bf16 %v892_v8, %v892_v8  ;;  %v2097_v12 = vpop.f32.mrb[3].mxu0 }
 0x1da   : > { %1018 = vrot.lane.b32.xlu1 %v3262_v11, %s2719_s21  ;;  %899 = vrot.lane.b32.xlu0 %v3262_v11, %s2720_s7  ;;  %s3643_s21 = scalar_lea.vmem [#allocation9], %s3168_s1  ;;  %s3646_s7 = sld [smem:[#allocation27_spill]] }
 0x1de   : > { %1134 = vrot.lane.b32.xlu1 %v3262_v11, %s2721_s24  ;;  %1020 = vrot.lane.b32.xlu0 %v3262_v11, %s2722_s8  ;;  %s3647_s24 = sld [smem:[#allocation39_spill]] }
 0x1e0   : > { %s2052_s8 = sshll.u32 %s3646_s7, 3 }
 0x1e2   : > { %1248 = vrot.lane.b32.xlu1 %v3262_v11, %s2723_s20  ;;  %1132 = vrot.lane.b32.xlu0 %v3262_v11, %s2724_s14  ;;  %s1703_s14 = sshll.u32 %s3237_s27, 4  ;;  %s3378_s14 = int_to_ptr.vmem [resolvable:$true] %s1703_s14 }
 0x1e4   : > { %p3650_p1 = scmp.ne.s32.totalorder %s3647_s24, 0 }
 0x1e6   : > { %1246 = vrot.lane.b32.xlu0 %v3262_v11, %s2725_s28 }
 0x24c   : > { %v900_v13 = vpop.permute.xlu0 %899  ;;  %v1019_v16 = vpop.permute.xlu1 %1018 }
 0x24d   : > { %v906_v14 = vsel %vm901_vm3, %v900_v13, 0 }
 0x24e   : > { %2099 = vmatpush3.bf16.xpose.msra.mxu1 %v906_v14 }
 0x24f   : > { %2110 = vmatprep.subr.bf16.mxu1 %v2717_v2 }
 0x250   : > { %v1021_v15 = vpop.permute.xlu0 %1020  ;;  %v1135_v18 = vpop.permute.xlu1 %1134 }
 0x251   : > { %v1026_v17 = vsel %vm901_vm3, %v1021_v15, 0  ;;  %v1140_v19 = vsel %vm901_vm3, %v1135_v18, 0 }
 0x254   : > { %v1249_v20 = vpop.permute.xlu1 %1248  ;;  %v1133_v21 = vpop.permute.xlu0 %1132 }
 0x255   : > { %2101 = vmatmul.mubr.msk.bf16.vlgmr.msra.gmra.mrb[0].mxu1 %vm901_vm3, %v3262_v11  ;;  %v1254_v22 = vsel %vm901_vm3, %v1249_v20, 0 }
 0x256   : > { %2111 = vmatpush3.bf16.xpose.msra.mxu1 %v1026_v17  ;;  %2112 = vmatprep.mubr.msk.bf16.mxu1 %vm2718_vm1, %v2717_v2 }
 0x257   : > { %2122 = vmatprep.subr.bf16.mxu1 %v2717_v2 }
 0x258   : > { %v1247_v23 = vpop.permute.xlu0 %1246 }
 0x25d   : > { %2113 = vmatmul.mubr.msk.bf16.vlgmr.msra.gmra.mrb[4].mxu1 %vm901_vm3, %v1019_v16 }
 0x25e   : > { %2123 = vmatpush3.bf16.xpose.msra.mxu1 %v1140_v19  ;;  %2124 = vmatprep.mubr.msk.bf16.mxu1 %vm2718_vm1, %v2717_v2 }
 0x25f   : > { %2134 = vmatprep.subr.bf16.mxu1 %v2717_v2 }
 0x265   : > { %2125 = vmatmul.mubr.msk.bf16.vlgmr.msra.gmra.mrb[8].mxu1 %vm901_vm3, %v1133_v21 }
 0x266   : > { %2135 = vmatpush3.bf16.xpose.msra.mxu1 %v1254_v22  ;;  %2136 = vmatprep.mubr.msk.bf16.mxu1 %vm2718_vm1, %v2717_v2 }
 0x267   : > { %2146 = vmatprep.subr.bf16.mxu1 %v2717_v2 }
 0x26d   : > { %2137 = vmatmul.mubr.msk.bf16.vlgmr.msra.gmra.mrb[12].mxu1 %vm901_vm3, %v1247_v23 }
 0x26e   : > { %2150 = vmatprep.mubr.msk.bf16.mxu1 %vm2718_vm1, %v2717_v2 }
 0x328   : > { %v942_v31 = vpop.f32.mrb[0].mxu1 }
 0x329   : > { %v948_v32 = vmul.f32 0.35355338, %v942_v31  ;;  %v2102_v33 = vpop.f32.mrb[1].mxu1 }
 0x32a   : > { %v945_v34 = vpop.f32.mrb[2].mxu1 }
 0x32b   : > { %v2103_v35 = vpop.f32.mrb[3].mxu1  ;;  %v955_v36 = vadd.f32 %v953_v30, %v948_v32 }
 0x32d   : > { %v956_v37 = vsel %vm901_vm3, %v955_v36, -inf }
 0x32e   : > { %957 = vmax.xlane.f32.xlu1 %v956_v37 }
 0x330   : > { %v1062_v38 = vpop.f32.mrb[4].mxu1 }
 0x331   : > { %v1068_v39 = vmul.f32 0.35355338, %v1062_v38  ;;  %v2114_v40 = vpop.f32.mrb[5].mxu1 }
 0x332   : > { %v1065_v41 = vpop.f32.mrb[6].mxu1 }
 0x333   : > { %v2115_v42 = vpop.f32.mrb[7].mxu1  ;;  %v1069_v43 = vadd.f32 %v1068_v39, %v953_v30 }
 0x335   : > { %v1070_v44 = vsel %vm901_vm3, %v1069_v43, -inf }
 0x336   : > { %1071 = vmax.xlane.f32.xlu0 %v1070_v44 }
 0x338   : > { %v1176_v45 = vpop.f32.mrb[8].mxu1 }
 0x339   : > { %v1182_v46 = vmul.f32 0.35355338, %v1176_v45  ;;  %v2126_v47 = vpop.f32.mrb[9].mxu1 }
 0x33a   : > { %v1179_v48 = vpop.f32.mrb[10].mxu1 }
 0x33b   : > { %v2127_v49 = vpop.f32.mrb[11].mxu1  ;;  %v1183_v50 = vadd.f32 %v1182_v46, %v953_v30 }
 0x33c   : > { %v2344_v49 = vld [vmem:[%s3209_s17] sm:$0xff]  }
 0x33d   : > { %v1184_v51 = vsel %vm901_vm3, %v1183_v50, -inf  ;;  %2147 = vmatpush3.bf16.msra.mxu1 %v2344_v49 }
 0x33e   : > { %1185 = vmax.xlane.f32.xlu0 %v1184_v51  ;;  %2148 = vmatprep.subr.bf16.mxu1 %v2717_v2 }
 0x340   : > { %v1290_v52 = vpop.f32.mrb[12].mxu1 }
 0x341   : > { %v1296_v53 = vmul.f32 0.35355338, %v1290_v52  ;;  %v2138_v54 = vpop.f32.mrb[13].mxu1 }
 0x342   : > { %v1293_v55 = vpop.f32.mrb[14].mxu1 }
 0x343   : > { %v2139_v56 = vpop.f32.mrb[15].mxu1  ;;  %v1297_v57 = vadd.f32 %v1296_v53, %v953_v30 }
 0x345   : > { %v1298_v58 = vsel %vm901_vm3, %v1297_v57, -inf }
 0x346   : > { %1299 = vmax.xlane.f32.xlu1 %v1298_v58 }
 0x3bb   : > { %v958_v59 = vpop.xlane.xlu1 %957 }
 0x3bc   : > { %v959_v60 = vsub.f32 %v955_v36, %v958_v59 }
 0x3be   : > { %v960_v61 = vmul.f32 1.442695, %v959_v60 }
 0x3c0   : > { %2352 = vpow2.f32 %v960_v61 }
 0x3c3   : > { %v1072_v62 = vpop.xlane.xlu0 %1071 }
 0x3c4   : > { %v1073_v63 = vsub.f32 %v1069_v43, %v1072_v62 }
 0x3c6   : > { %v1074_v0 = vmul.f32 1.442695, %v1073_v63 }
 0x3c8   : > { %2354 = vpow2.f32 %v1074_v0 }
 0x3ca   : > { %v2353_v1 = vpop.eup %2352 }
 0x3cb   : > { %v1186_v3 = vpop.xlane.xlu0 %1185  ;;  %v962_v5 = vsel %vm901_vm3, %v2353_v1, 0.0 }
 0x3cc   : > { %v1187_v6 = vsub.f32 %v1183_v50, %v1186_v3  ;;  %963 = vadd.xlane.f32.xlu0 %v962_v5  ;;  %v2345_v50 = vld [vmem:[%s3209_s17 + $0x8] sm:$0xff]   ;;  %s3641_s17 = scalar_lea.vmem [#allocation6], %s3168_s1 }
 0x3cd   : > { %2149 = vmatpush3.bf16.msra.mxu1 %v2345_v50  ;;  %v2029_v3 = vld [vmem:[%s3641_s17] ss:$0 sm:$0xff] }
 0x3ce   : > { %v1188_v7 = vmul.f32 1.442695, %v1187_v6  ;;  %2162 = vmatprep.subr.bf16.mxu1 %v2717_v2 }
 0x3d0   : > { %2356 = vpow2.f32 %v1188_v7 }
 0x3d2   : > { %v2355_v8 = vpop.eup %2354 }
 0x3d3   : > { %v1076_v9 = vsel %vm901_vm3, %v2355_v8, 0.0  ;;  %v1300_v13 = vpop.xlane.xlu1 %1299 }
 0x3d4   : > { %1077 = vadd.xlane.f32.xlu1 %v1076_v9  ;;  %v1301_v14 = vsub.f32 %v1297_v57, %v1300_v13 }
 0x3d6   : > { %v1302_v15 = vmul.f32 1.442695, %v1301_v14 }
 0x3d8   : > { %2358 = vpow2.f32 %v1302_v15 }
 0x3da   : > { %v2357_v10 = vpop.eup %2356 }
 0x3db   : > { %v1190_v12 = vsel %vm901_vm3, %v2357_v10, 0.0 }
 0x3dc   : > { %1191 = vadd.xlane.f32.xlu0 %v1190_v12 }
 0x3e2   : > { %v2359_v16 = vpop.eup %2358 }
 0x3e3   : > { %v1304_v17 = vsel %vm901_vm3, %v2359_v16, 0.0 }
 0x3e5   : > { %1084 = vrot.lane.b32.xlu1 %v3262_v11, %s2726_s9 }
 0x3f2   : > { %969 = vrot.lane.b32.xlu0 %v3262_v11, %s2727_s0  ;;  %s1673_s0 = scalar_lea.sflag [#allocation14], %s3182_s3 }
 0x3f6   : > { %1312 = vrot.lane.b32.xlu0 %v3262_v11, %s2728_s4  ;;  %s2524_s4 = scalar_lea.vmem %s3378_s14, 512 }
 0x3f7   : > { %p2525_p4 = scmp.ne.s32.totalorder %s3378_s14, %s2524_s4 }
 0x3f9   : > { %p2526_p12 = pnand %p2525_p4, %p3650_p1 }
 0x3fb   : > { %p2527_p0 = pneg %p2526_p12 }
 0x409   : > { %1305 = vadd.xlane.f32.xlu1 %v1304_v17 }
 0x41a   : > { %1198 = vrot.lane.b32.xlu1 %v3262_v11, %s2729_s18  ;;  %s2733_s18 = smov [#allocation13]  }
 0x459   : > { %v964_v18 = vpop.xlane.xlu0 %963 }
 0x45a   : > { %2360 = vrcp.f32 %v964_v18  ;;  %v2346_v18 = vld [vmem:[%s3214_s19] sm:$0xff]  }
 0x461   : > { %v1078_v19 = vpop.xlane.xlu1 %1077 }
 0x462   : > { %2362 = vrcp.f32 %v1078_v19  ;;  %v2347_v19 = vld [vmem:[%s3214_s19 + $0x8] sm:$0xff]  }
 0x464   : > { %v2361_v20 = vpop.eup %2360 }
 0x465   : > { %v966_v21 = vmul.f32 %v2361_v20, %v2353_v1  ;;  %v1085_v11 = vpop.permute.xlu1 %1084 }
 0x466   : > { %v1090_v28 = vsel %vm974_vm4, %v1085_v11, 0 }
 0x467   : > { %967 = vst.msk [vmem:[%s3237_s27] sm:$0xff] %vm901_vm3, %v966_v21  ;;  %v968_v27 = vpack.c.bf16 %v966_v21, %v966_v21 }
 0x469   : > { %v1192_v22 = vpop.xlane.xlu0 %1191 }
 0x46a   : > { %2364 = vrcp.f32 %v1192_v22 }
 0x46c   : > { %v2363_v23 = vpop.eup %2362 }
 0x46d   : > { %v1080_v24 = vmul.f32 %v2363_v23, %v2355_v8  ;;  %v970_v25 = vpop.permute.xlu0 %969  ;;  %v2033_v23 = vld [vmem:[%s3642_s2] ss:$0 sm:$0xff] }
 0x46e   : > { %v976_v26 = vsel %vm974_vm4, %v970_v25, 0  ;;  %v2034_v25 = vld [vmem:[%s3643_s21] ss:$0 sm:$0xff] }
 0x46f   : > { %2021 = vst.msk [vmem:[%s3237_s27 + $0x8] sm:$0xff] %vm901_vm3, %v1080_v24  ;;  %2105 = vmatpush3.bf16.msra.mxu0 %v976_v26  ;;  %v1083_v31 = vpack.c.bf16 %v1080_v24, %v1080_v24 }
 0x470   : > { %2116 = vmatprep.subr.bf16.mxu0 %v2717_v2 }
 0x471   : > { %v1313_v35 = vpop.permute.xlu0 %1312 }
 0x472   : > { %2107 = vmatmul.mubr.msk.bf16.vlgmr.msra.gmra.mrb[4].mxu0 %vm901_vm3, %v968_v27  ;;  %v1318_v37 = vsel %vm974_vm4, %v1313_v35, 0 }
 0x473   : > { %2117 = vmatpush3.bf16.msra.mxu0 %v1090_v28  ;;  %2118 = vmatprep.mubr.msk.bf16.mxu0 %vm2718_vm1, %v2717_v2  ;;  %v2348_v28 = vld [vmem:[%s3220_s30] sm:$0xff]  }
 0x474   : > { %v2365_v29 = vpop.eup %2364  ;;  %2128 = vmatprep.subr.bf16.mxu0 %v2717_v2 }
 0x475   : > { %v1194_v30 = vmul.f32 %v2365_v29, %v2357_v10  ;;  %v2349_v29 = vld [vmem:[%s3220_s30 + $0x8] sm:$0xff]  }
 0x477   : > { %2024 = vst.msk [vmem:[%s3237_s27 + $0x10] sm:$0xff] %vm901_vm3, %v1194_v30  ;;  %v1197_v36 = vpack.c.bf16 %v1194_v30, %v1194_v30  ;;  %v2350_v30 = vld [vmem:[%s3220_s30 + $0x10] sm:$0xff]  }
 0x47a   : > { %2119 = vmatmul.mubr.msk.bf16.vlgmr.msra.gmra.mrb[8].mxu0 %vm901_vm3, %v1083_v31  ;;  %v2351_v31 = vld [vmem:[%s3220_s30 + $0x18] sm:$0xff]  }
 0x47b   : > { %2130 = vmatprep.mubr.msk.bf16.mxu0 %vm2718_vm1, %v2717_v2 }
 0x496   : > { %v1306_v32 = vpop.xlane.xlu1 %1305 }
 0x497   : > { %2366 = vrcp.f32 %v1306_v32  ;;  %v2035_v32 = vld [vmem:[%s679_s22] ss:$0 sm:$0xff]  ;;  %s3645_s22 = sld [smem:[#allocation28_spill]] }
 0x49a   : > { %v1199_v33 = vpop.permute.xlu1 %1198 }
 0x49b   : > { %v1204_v34 = vsel %vm974_vm4, %v1199_v33, 0 }
 0x49c   : > { %2129 = vmatpush3.bf16.msra.mxu0 %v1204_v34 }
 0x49d   : > { %2140 = vmatprep.subr.bf16.mxu0 %v2717_v2 }
 0x49f   : > { %2131 = vmatmul.mubr.msk.bf16.vlgmr.msra.gmra.mrb[12].mxu0 %vm901_vm3, %v1197_v36 }
 0x4a0   : > { %2141 = vmatpush3.bf16.msra.mxu0 %v1318_v37  ;;  %2142 = vmatprep.mubr.msk.bf16.mxu0 %vm2718_vm1, %v2717_v2 }
 0x4a1   : > { %v2367_v38 = vpop.eup %2366  ;;  %2154 = vmatprep.subr.bf16.mxu0 %v2717_v2 }
 0x4a2   : > { %v1308_v39 = vmul.f32 %v2367_v38, %v2359_v16 }
 0x4a4   : > { %2027 = vst.msk [vmem:[%s3237_s27 + $0x18] sm:$0xff] %vm901_vm3, %v1308_v39  ;;  %v1311_v40 = vpack.c.bf16 %v1308_v39, %v1308_v39 }
 0x4a7   : > { %2143 = vmatmul.mubr.msk.bf16.vlgmr.msra.gmra.mrb[16].mxu0 %vm901_vm3, %v1311_v40 }
 0x4a8   : > { %2158 = vmatprep.mubr.msk.bf16.mxu0 %vm2718_vm1, %v2717_v2  ;;  %2155 = vmatpush3.bf16.msra.mxu0 %v2346_v18 }
 0x4a9   : > { %2156 = vmatprep.subr.bf16.mxu0 %v2717_v2 }
 0x4ac   : > { %2157 = vmatpush3.bf16.msra.mxu0 %v2347_v19 }
 0x545   : > { %v1012_v41 = vpop.f32.mrb[4].mxu0 }
 0x546   : > { %v2108_v42 = vpop.f32.mrb[5].mxu0 }
 0x547   : > { %v1015_v43 = vpop.f32.mrb[6].mxu0 }
 0x548   : > { %v2109_v44 = vpop.f32.mrb[7].mxu0 }
 0x54d   : > { %v1126_v45 = vpop.f32.mrb[8].mxu0 }
 0x54e   : > { %1361 = vrot.lane.b32.xlu1 %v1126_v45, %s2730_s16  ;;  %v2120_v46 = vpop.f32.mrb[9].mxu0 }
 0x54f   : > { %v1129_v47 = vpop.f32.mrb[10].mxu0 }
 0x550   : > { %v2121_v48 = vpop.f32.mrb[11].mxu0  ;;  %v2039_v47 = vld [vmem:[%s810_s10] ss:$0 sm:$0xff]  ;;  %s2051_s10 = sshll.u32 %s3645_s22, 2 }
 0x551   : > { %s1700_s20 = sadd.s32 %s2052_s8, %s2051_s10 }
 0x552   : > { %s2053_s28 = sshll.u32 %s1700_s20, 7 }
 0x553   : > { %s3383_s9 = scalar_lea.hbm %s3648_s23, %s2053_s28 }
 0x572   : > { %v1240_v51 = vpop.f32.mrb[12].mxu0 }
 0x573   : > { %1365 = vrot.lane.b32.xlu0 %v1240_v51, %s2731_s5  ;;  %v2132_v52 = vpop.f32.mrb[13].mxu0  ;;  %s2528_s5 = sshll.u32 %s2733_s18, 4  ;;  %s2529_s5 = int_to_ptr.vmem [resolvable:$false] %s2528_s5 }
 0x574   : > { %v1243_v53 = vpop.f32.mrb[14].mxu0  ;;  %s2530_s27 = scalar_lea.vmem %s2529_s5, 1024  ;;  %p2531_p7 = scmp.lt.s32.totalorder %s3378_s14, %s2529_s5 }
 0x575   : > { %v2133_v54 = vpop.f32.mrb[15].mxu0  ;;  %p2532_p5 = scmp.lt.s32.totalorder %s2530_s27, %s2524_s4 }
 0x577   : > { %p2533_p2 = por %p2532_p5, %p2531_p7 }
 0x579   : > { %p2534_p6 = pnand %p2533_p2, %p2527_p0 }
 0x57a   : > { %v1354_v55 = vpop.f32.mrb[16].mxu0 }
 0x57b   : > { %1369 = vrot.lane.b32.xlu1 %v1354_v55, %s2732_s13  ;;  %v2144_v56 = vpop.f32.mrb[17].mxu0 }
 0x57c   : > { %v1357_v57 = vpop.f32.mrb[18].mxu0 }
 0x57d   : > { %v2145_v58 = vpop.f32.mrb[19].mxu0 }
 0x5c0   : > { %v1362_v59 = vpop.permute.xlu1 %1361 }
 0x5c1   : > { %v1372_v61 = vsel %vm901_vm3, %v1012_v41, %v1362_v59 }
 0x5e5   : > { %v1366_v60 = vpop.permute.xlu0 %1365 }
 0x5e6   : > { %v1374_v62 = vsel %vm1373_vm5, %v1372_v61, %v1366_v60 }
 0x5ed   : > { %v1370_v63 = vpop.permute.xlu1 %1369 }
 0x5ee   : > { %v1376_v0 = vsel %vm1375_vm6, %v1374_v62, %v1370_v63 }
 0x5ef   : > { %v1377_v1 = vpack.c.bf16 %v1376_v0, %v1376_v0 }
 0x5f1   : > { %2151 = vmatmul.mubr.msk.bf16.vlgmr.msra.gmra.mrb[16].mxu1 %vm853_vm2, %v1377_v1 }
 0x5f2   : > { %2170 = vmatprep.mubr.msk.bf16.mxu1 %vm2718_vm1, %v2717_v2  ;;  %2163 = vmatpush3.bf16.msra.mxu1 %v2348_v28 }
 0x5f3   : > { %2164 = vmatprep.subr.bf16.mxu1 %v2717_v2 }
 0x5f6   : > { %2165 = vmatpush3.bf16.msra.mxu1 %v2349_v29 }
 0x5f7   : > { %2166 = vmatprep.subr.bf16.mxu1 %v2717_v2 }
 0x5fa   : > { %2167 = vmatpush3.bf16.msra.mxu1 %v2350_v30 }
 0x5fb   : > { %2168 = vmatprep.subr.bf16.mxu1 %v2717_v2 }
 0x5fe   : > { %2169 = vmatpush3.bf16.msra.mxu1 %v2351_v31 }
 0x6c4   : > { %v1438_v5 = vpop.f32.mrb[16].mxu1 }
 0x6c5   : > { %v1439_v6 = vadd.f32 %v2029_v3, %v1438_v5  ;;  %v2152_v7 = vpop.f32.mrb[17].mxu1 }
 0x6c6   : > { %v1441_v8 = vpop.f32.mrb[18].mxu1 }
 0x6c7   : > { %v2153_v9 = vpop.f32.mrb[19].mxu1  ;;  %v1444_v10 = vadd.f32 %v1439_v6, %v3246_v4 }
 0x6c9   : > { %v1447_v12 = vsel %vm853_vm2, %v1444_v10, 0.0 }
 0x6ca   : > { %1448 = vadd.xlane.f32.xlu0 %v1447_v12 }
 0x757   : > { %v1449_v13 = vpop.xlane.xlu0 %1448 }
 0x758   : > { %v1451_v14 = vmul.f32 0.03125, %v1449_v13 }
 0x75a   : > { %v1452_v15 = vsub.f32 %v1444_v10, %v1451_v14 }
 0x75c   : > { %v1453_v16 = vmul.f32 %v1452_v15, %v1452_v15 }
 0x75e   : > { %v1454_v17 = vsel %vm853_vm2, %v1453_v16, 0.0 }
 0x75f   : > { %1455 = vadd.xlane.f32.xlu1 %v1454_v17 }
 0x7ec   : > { %v1456_v4 = vpop.xlane.xlu1 %1455 }
 0x7ed   : > { %v1457_v20 = vmul.f32 0.03125, %v1456_v4 }
 0x7ef   : > { %v1458_v21 = vadd.f32 1e-05, %v1457_v20 }
 0x7f1   : > { %2368 = vrsqrt.f32 %v1458_v21 }
 0x7fb   : > { %v2369_v22 = vpop.eup %2368 }
 0x7fc   : > { %v1460_v24 = vmul.f32 %v2369_v22, %v1452_v15 }
 0x7fe   : > { %v1467_v26 = vmul.f32 %v2033_v23, %v1460_v24 }
 0x800   : > { %v1474_v11 = vadd.f32 %v2034_v25, %v1467_v26 }
 0x802   : > { %v1475_v27 = vpack.c.bf16 %v1474_v11, %v1474_v11 }
 0x804   : > { %2159 = vmatmul.mubr.msk.bf16.vlgmr.msra.gmra.mrb[20].mxu0 %vm853_vm2, %v1475_v27 }
 0x8d7   : > { %v1536_v33 = vpop.f32.mrb[20].mxu0 }
 0x8d8   : > { %v1537_v34 = vadd.f32 %v2035_v32, %v1536_v33  ;;  %v2160_v35 = vpop.f32.mrb[21].mxu0 }
 0x8d9   : > { %v1539_v36 = vpop.f32.mrb[22].mxu0 }
 0x8da   : > { %v1543_v37 = vmul.f32 0.044715, %v1537_v34  ;;  %v2161_v38 = vpop.f32.mrb[23].mxu0  ;;  %v1542_v44 = vmul.f32 0.5, %v1537_v34 }
 0x8dc   : > { %v1544_v39 = vmul.f32 %v1543_v37, %v1537_v34 }
 0x8de   : > { %v1545_v40 = vmul.f32 %v1544_v39, %v1537_v34 }
 0x8e0   : > { %v1546_v41 = vadd.f32 %v1545_v40, %v1537_v34 }
 0x8e2   : > { %v1547_v42 = vmul.f32 0.7978846, %v1546_v41 }
 0x8e4   : > { %2370 = vtanh.f32 %v1547_v42 }
 0x8ee   : > { %v2371_v43 = vpop.eup %2370 }
 0x8ef   : > { %v1549_v45 = vadd.f32 1.0, %v2371_v43 }
 0x8f1   : > { %v1550_v46 = vmul.f32 %v1549_v45, %v1542_v44 }
 0x8f3   : > { %v1551_v2 = vpack.c.bf16 %v1550_v46, %v1550_v46 }
 0x8f5   : > { %2171 = vmatmul.mubr.msk.bf16.vlgmr.msra.gmra.mrb[20].mxu1 %vm1591_vm7, %v1551_v2 }
 0x9c8   : > { %v1629_v48 = vpop.f32.mrb[20].mxu1 }
 0x9c9   : > { %v1630_v49 = vadd.f32 %v2039_v47, %v1629_v48  ;;  %v2172_v50 = vpop.f32.mrb[21].mxu1 }
 0x9ca   : > { %v1632_v51 = vpop.f32.mrb[22].mxu1 }
 0x9cb   : > { %v2173_v52 = vpop.f32.mrb[23].mxu1  ;;  %v1635_v53 = vadd.f32 %v1630_v49, %v1474_v11 }
 0x9cd   : > { %v1638_v54 = vsel %vm853_vm2, %v1635_v53, 0.0 }
 0x9ce   : > { %1639 = vadd.xlane.f32.xlu0 %v1638_v54 }
 0xa5b   : > { %v1640_v55 = vpop.xlane.xlu0 %1639 }
 0xa5c   : > { %v1641_v56 = vmul.f32 0.03125, %v1640_v55 }
 0xa5e   : > { %v1642_v57 = vsub.f32 %v1635_v53, %v1641_v56 }
 0xa60   : > { %v1643_v58 = vmul.f32 %v1642_v57, %v1642_v57 }
 0xa62   : > { %v1644_v59 = vsel %vm853_vm2, %v1643_v58, 0.0 }
 0xa63   : > { %1645 = vadd.xlane.f32.xlu0 %v1644_v59 }
 0xa64   : > { %2537 = shalt.err (!%p2534_p6)
}
 0xa65   : > { %s2538_s13 = scalar_lea.hbm %s3383_s9, 512  ;;  %s2542_s21 = scalar_lea.hbm %s3649_s12, 2048 }
 0xa66   : > { %p2539_p3 = scmp.ne.s32.totalorder %s3383_s9, %s2538_s13  ;;  %p2543_p8 = scmp.lt.u32.totalorder %s3383_s9, %s3649_s12 }
 0xa67   : > { %p2544_p9 = scmp.lt.u32.totalorder %s2542_s21, %s2538_s13  ;;  %p2546_p4 = scmp.lt.u32.totalorder %s2538_s13, %s3383_s9 }
 0xa68   : > { %p2540_p11 = pnand %p2539_p3, %p3650_p1 }
 0xa69   : > { %p2545_p10 = por %p2544_p9, %p2543_p8 }
 0xa6a   : > { %p2541_p13 = pneg %p2540_p11 }
 0xa6b   : > { %p2547_p12 = por %p2546_p4, %p2545_p10 }
 0xa6d   : > { %p2548_p0 = pnand %p2547_p12, %p2541_p13 }
 0xa6f   : > { %2551 = shalt.err (!%p2548_p0)
}
 0xa70   : > { %s2734_s30 = smov 128   ;;  %s2049_s10 = sshll.u32 %s3646_s7, 1  ;;  %v2045_v0 = vld [vmem:[%s813_s6] ss:$0 sm:$0xff] }
 0xa71   : > { %2185 = dma.vmem_to_hbm [thread:$0]  (%p3650_p1), %s3378_s14, 512, %s3383_s9, %s1673_s0, %s2734_s30, %s2734_s30, %s2730_s16  }
 0xa72   : > { %s1684_s8 = sadd.s32 %s3645_s22, %s2049_s10  ;;  %v2046_v3 = vld [vmem:[%s816_s25] ss:$0 sm:$0xff]  ;;  %s1688_s14 = sshll.u32 %s3235_s29, 4  ;;  %s3428_s14 = int_to_ptr.vmem [resolvable:$true] %s1688_s14 }
 0xa73   : > { %s2050_s16 = sshll.u32 %s1684_s8, 7  ;;  %s3653_s22 = sld [smem:[#allocation55_spill]] }
 0xa74   : > { %s1668_s11 = scalar_lea.sflag [#allocation5], %s3182_s3  ;;  %s2552_s6 = scalar_lea.vmem %s3428_s14, 128 }
 0xa75   : > { %p2553_p7 = scmp.ne.s32.totalorder %s3428_s14, %s2552_s6  ;;  %s2735_s25 = smov [#allocation12]  }
 0xa76   : > { %s2556_s5 = sshll.u32 %s2735_s25, 4  ;;  %s2557_s5 = int_to_ptr.vmem [resolvable:$false] %s2556_s5 }
 0xa77   : > { %p2554_p5 = pnand %p2553_p7, %p3650_p1  ;;  %s2558_s27 = scalar_lea.vmem %s2557_s5, 256 }
 0xa78   : > { %p2559_p6 = scmp.lt.s32.totalorder %s3428_s14, %s2557_s5  ;;  %p2560_p3 = scmp.lt.s32.totalorder %s2558_s27, %s2552_s6 }
 0xa79   : > { %s3654_s0 = smov %s3653_s22  ;;  %s3426_s18 = scalar_lea.hbm %s3653_s22, %s2050_s16 }
 0xa7a   : > { %p2555_p2 = pneg %p2554_p5  ;;  %p2561_p11 = por %p2560_p3, %p2559_p6 }
 0xa7c   : > { %p2562_p13 = pnand %p2561_p11, %p2555_p2 }
 0xaf0   : > { %v1646_v60 = vpop.xlane.xlu0 %1645 }
 0xaf1   : > { %v1647_v61 = vmul.f32 0.03125, %v1646_v60 }
 0xaf3   : > { %v1648_v62 = vadd.f32 1e-05, %v1647_v61 }
 0xaf5   : > { %2372 = vrsqrt.f32 %v1648_v62 }
 0xaff   : > { %v2373_v63 = vpop.eup %2372 }
 0xb00   : > { %v1650_v1 = vmul.f32 %v2373_v63, %v1642_v57 }
 0xb02   : > { %v1657_v5 = vmul.f32 %v2045_v0, %v1650_v1 }
 0xb04   : > { %v1664_v6 = vadd.f32 %v2046_v3, %v1657_v5 }
 0xb06   : > { %1665 = vst.msk [vmem:[#allocation2] sm:$0xff] %vm853_vm2, %v1664_v6  ;;  %1666 = vst.msk [vmem:[%s3235_s29] sm:$0xff] %vm853_vm2, %v1664_v6 }
 0xb07   : > { %2565 = shalt.err (!%p2562_p13)
}
 0xb08   : > { %s2566_s3 = scalar_lea.hbm %s3426_s18, 128  ;;  %s2570_s17 = scalar_lea.hbm %s3654_s0, 512 }
 0xb09   : > { %p2567_p8 = scmp.ne.s32.totalorder %s3426_s18, %s2566_s3  ;;  %p2571_p4 = scmp.lt.u32.totalorder %s3426_s18, %s3654_s0 }
 0xb0a   : > { %p2572_p12 = scmp.lt.u32.totalorder %s2570_s17, %s2566_s3  ;;  %p2574_p7 = scmp.lt.u32.totalorder %s2566_s3, %s3426_s18 }
 0xb0b   : > { %p2568_p9 = pnand %p2567_p8, %p3650_p1 }
 0xb0c   : > { %p2573_p0 = por %p2572_p12, %p2571_p4 }
 0xb0d   : > { %p2569_p10 = pneg %p2568_p9 }
 0xb0e   : > { %p2575_p5 = por %p2574_p7, %p2573_p0 }
 0xb10   : > { %p2576_p2 = pnand %p2575_p5, %p2569_p10 }
 0xb12   : > { %2579 = shalt.err (!%p2576_p2)
}
 0xb13   : > { %2184 = dma.vmem_to_hbm [thread:$0]  (%p3650_p1), %s3428_s14, 128, %s3426_s18, %s1668_s11  }
 0xb14 PF: > { %s3655_s19 = sld [smem:[#allocation31_spill]]  ;;  %s3656_s1 = sld [smem:[#allocation20_spill]] }
 0xb15   : > { %s3657_s30 = sld [smem:[#allocation40_spill]] }
 0xb1a   : > { %p2212_p6 = scmp.ge.s32.totalorder %s3655_s19, 2  ;;  %s1718_s10 = sand.u32 1, %s3656_s1  }
 0xb1b   : > { %p3658_p3 = scmp.ne.s32.totalorder %s3657_s30, 0  ;;  %s1719_s8 = scalar_lea.sflag [#allocation5], %s1718_s10 }
 0xb1d   : > { %p2205_p11 = pnand %p2212_p6, %p3658_p3 }
 0xb1f   : > { %2649 = dma.done.wait (!%p2205_p11), %s1719_s8, 128  }
 0xb20   : > { %2651 = vsyncadd (!%p2205_p11), %s1719_s8, 4294967168  ;;  %s1728_s20 = scalar_lea.sflag [#allocation14], %s1718_s10 }
 0xb21   : > { %2653 = dma.done.wait (!%p2205_p11), %s1728_s20, 512  }
 0xb22   : > { %2655 = vsyncadd (!%p2205_p11), %s1728_s20, 4294966784  ;;  %s41_s16 = sadd.s32 1, %s3655_s19   ;;  %s3660_s18 = sld [smem:[#allocation21_spill]] }
 0xb23   : > { %p3460_p13 = scmp.ge.s32.totalorder %s41_s16, 6   ;;  %s3661_s19 = sld [smem:[#allocation22_spill]] }
 0xb24   : > { %s3662_s20 = sld [smem:[#allocation38_spill]]  ;;  %s3663_s21 = sld [smem:[#allocation23_spill]] }
 0xb25   : > { %s3664_s22 = sld [smem:[#allocation24_spill]]  ;;  %s3665_s23 = sld [smem:[#allocation33_spill]] }
 0xb26   : > { %s3666_s28 = sld [smem:[#allocation25_spill]]  ;;  %s3667_s25 = sld [smem:[#allocation26_spill]] }
 0xb27   : > { %s3668_s26 = sld [smem:[#allocation37_spill]]  ;;  %s3669_s27 = sld [smem:[#allocation29_spill]] }
 0xb28   : > { %s3670_s15 = sld [smem:[#allocation30_spill]]  ;;  %s3671_s29 = sld [smem:[#allocation32_spill]] }
 0xb29   : > { %s3672_s30 = sld [smem:[#allocation36_spill]]  ;;  %40 = sbr.rel (!%p3460_p13) target bundleno = 33 (0x21), region = 220 }
 0xb2c   : > { %s3674_s24 = smov %s3666_s28 }
 0xb2e   : > { %s3675_s28 = smov %s3670_s15 }
 0xb30   :  { %1733 = vsyncpa [#allocation4], 1 }
 0xb31   :  { %1735 = vsyncpa [#allocation4 + $0x1], 1 }
 0xb32   :  { %1736 = vsyncpa [#allocation7], 1 }
 0xb33   :  { %1738 = vsyncpa [#allocation7 + $0x1], 1 }
 0xb34   :  { %1739 = vsyncpa [#allocation10], 1 }
 0xb35   :  { %1741 = vsyncpa [#allocation10 + $0x1], 1 }
 0xb36   :  { %1742 = vsyncpa [#allocation5], 1 }
 0xb37   :  { %1744 = vsyncpa [#allocation5 + $0x1], 1 }
 0xb38   :  { %1745 = vsyncpa [#allocation14], 1 }
 0xb39   :  { %1747 = vsyncpa [#allocation14 + $0x1], 1 }

</bundles_post_ra>
